<compile_context>
chip_gen: v7x
topology: tpu7x:2x2x1
jax: 0.10.0
libtpu: 0.0.40
codegen_flags: <defaults>
</compile_context>

<pallas_src>
import functools

import jax
import jax.numpy as jnp
from jax import lax
from jax.experimental import pallas as pl
from jax.experimental.pallas import tpu as pltpu

_OFFSETS = tuple((dy, dx) for dy in (-1, 0, 1) for dx in (-1, 0, 1))


def _round_up(x, m):
    return -(-x // m) * m


def _make_triple_conv_kernel(H, W, slope, kmax):
    """Kernel over (C_pad, N) activations; N = (B/chunks)*H*W, batch on lanes."""

    def kernel(x_ref, w_ref, m_ref, o_ref, patches_ref):
        n = x_ref.shape[1]

        # One-time init of the im2col scratch: zero everything, set the last
        # row (the "ones" row that carries the folded bias column) to 1.0.
        @pl.when(pl.program_id(0) == 0)
        def _():
            row = lax.broadcasted_iota(jnp.int32, (kmax, n), 0)
            patches_ref[...] = (row == (kmax - 1)).astype(jnp.float32)

        def conv3x3_lrelu(x, conv_idx):
            # x: (C, N) f32.  Writes 9 shifted/masked taps (tap-major,
            # channel-minor) into the scratch, then one MXU matmul with
            # K = kmax (taps + bias row), then LeakyReLU.
            c = x.shape[0]
            for t, (dy, dx) in enumerate(_OFFSETS):
                if dy == 0 and dx == 0:
                    tap = x                                   # center tap: no shift/mask
                else:
                    d = dy * W + dx
                    mi = t if t < 4 else t - 1                # mask rows skip the center
                    shifted = pltpu.roll(x, shift=(-d) % n, axis=1)   # XLU lane roll
                    tap = shifted * m_ref[pl.ds(mi, 1), :]    # zero across image borders
                patches_ref[pl.ds(t * c, c), :] = tap
            y = jnp.dot(w_ref[conv_idx], patches_ref[...],
                        preferred_element_type=jnp.float32)   # one MXU contraction
            return jnp.maximum(y, slope * y)                  # LeakyReLU(slope)

        y = conv3x3_lrelu(x_ref[...], 0)
        y = conv3x3_lrelu(y, 1)
        y = conv3x3_lrelu(y, 2)
        o_ref[...] = y.astype(o_ref.dtype)                    # lane-dense store

    return kernel


def _pack_weights_biases(ws, bs, cins_pad, cout_pad, kmax):
    """PyTorch (Cout, Cin, 3, 3) weights + (Cout,) biases -> (3, cout_pad, kmax).

    Columns [0, 9*cin_pad) are tap-major / channel-minor weights; column
    kmax-1 carries the bias (contracted against the constant ones row);
    everything else is zero so stale scratch rows contribute nothing.
    """
    packs = []
    for w, b, cpad in zip(ws, bs, cins_pad):
        co, ci = w.shape[0], w.shape[1]
        wt = jnp.transpose(w, (0, 2, 3, 1))                       # (co, 3, 3, ci)
        wt = jnp.pad(wt, ((0, cout_pad - co), (0, 0), (0, 0), (0, cpad - ci)))
        wt = wt.reshape(cout_pad, 9 * cpad)
        full = jnp.zeros((cout_pad, kmax), jnp.float32)
        full = full.at[:, : 9 * cpad].set(wt)
        full = full.at[:co, kmax - 1].set(b)
        packs.append(full)
    return jnp.stack(packs, axis=0)


def _build_masks(H, W, n_images):
    """(8, n_images*H*W) f32 border-validity masks for the 8 non-center taps."""
    HW = H * W
    lane = jnp.arange(n_images * HW, dtype=jnp.int32) % HW
    hh = lane // W
    ww = lane % W
    rows = []
    for dy, dx in _OFFSETS:
        if dy == 0 and dx == 0:
            continue
        valid = ((hh + dy >= 0) & (hh + dy < H) &
                 (ww + dx >= 0) & (ww + dx < W))
        rows.append(valid.astype(jnp.float32))
    return jnp.stack(rows, axis=0)


@functools.partial(jax.jit, static_argnames=("batch_chunks",))
def triple_conv_lr(x_nchw, w1, b1, w2, b2, w3, b3, batch_chunks=1):
    """TripleConv_LR forward.  x: (B, Cin, H, W) f32 -> (B, Cout, H, W) f32."""
    # TODO(synk): only stride=1 (the module default) is implemented for conv1.
    B, Cin, H, W = x_nchw.shape
    Cout = w1.shape[0]
    HW = H * W
    assert B % batch_chunks == 0
    n_chunk = (B // batch_chunks) * HW

    cin_pad = _round_up(Cin, 8)
    cout_pad = _round_up(Cout, 8)
    kmax = _round_up(9 * max(cin_pad, cout_pad) + 1, 8)   # taps + bias column

    # Activations: channels on sublanes, batch folded into the lane axis.
    x_cn = jnp.transpose(x_nchw, (1, 0, 2, 3)).reshape(Cin, B * HW)
    if cin_pad != Cin:
        x_cn = jnp.pad(x_cn, ((0, cin_pad - Cin), (0, 0)))

    wpack = _pack_weights_biases((w1, w2, w3), (b1, b2, b3),
                                 (cin_pad, cout_pad, cout_pad), cout_pad, kmax)
    masks = _build_masks(H, W, B // batch_chunks)

    flops = 2 * 3 * cout_pad * kmax * B * HW
    bytes_accessed = 4 * (cin_pad * B * HW + 3 * cout_pad * kmax
                          + 8 * n_chunk + cout_pad * B * HW)

    out = pl.pallas_call(
        _make_triple_conv_kernel(H, W, 0.1, kmax),
        out_shape=jax.ShapeDtypeStruct((cout_pad, B * HW), jnp.float32),
        grid_spec=pltpu.PrefetchScalarGridSpec(
            num_scalar_prefetch=0,
            grid=(batch_chunks,),
            in_specs=[
                pl.BlockSpec((cin_pad, n_chunk), lambda i: (0, i)),
                pl.BlockSpec((3, cout_pad, kmax), lambda i: (0, 0, 0)),
                pl.BlockSpec((8, n_chunk), lambda i: (0, 0)),
            ],
            out_specs=pl.BlockSpec((cout_pad, n_chunk), lambda i: (0, i)),
            scratch_shapes=[pltpu.VMEM((kmax, n_chunk), jnp.float32)],
        ),
        compiler_params=pltpu.CompilerParams(
            dimension_semantics=("parallel",),
        ),
        cost_estimate=pl.CostEstimate(flops=flops, transcendentals=0,
                                      bytes_accessed=bytes_accessed),
    )(x_cn, wpack, masks)

    out = out[:Cout].reshape(Cout, B, H, W)
    return jnp.transpose(out, (1, 0, 2, 3))


def _reference(x, w1, b1, w2, b2, w3, b3, slope=0.1):
    """Pure-JAX reference matching PyTorch semantics (NCHW / OIHW)."""
    def conv(x, w, b):
        y = lax.conv_general_dilated(
            x, w, window_strides=(1, 1), padding="SAME",
            dimension_numbers=("NCHW", "OIHW", "NCHW"))
        return y + b[None, :, None, None]

    def lrelu(v):
        return jnp.where(v >= 0.0, v, slope * v)

    y = lrelu(conv(x, w1, b1))
    y = lrelu(conv(y, w2, b2))
    y = lrelu(conv(y, w3, b3))
    return y


if __name__ == "__main__":
    B, Cin, Cout, H, W = 2, 4, 8, 16, 16

    key = jax.random.PRNGKey(0)
    k_x, k_w1, k_b1, k_w2, k_b2, k_w3, k_b3 = jax.random.split(key, 7)

    x = jax.random.normal(k_x, (B, Cin, H, W), jnp.float32)
    # PyTorch conv layout: (Cout, Cin, kh, kw); per-output-channel biases.
    w1 = jax.random.normal(k_w1, (Cout, Cin, 3, 3), jnp.float32) * 0.1
    b1 = jax.random.normal(k_b1, (Cout,), jnp.float32) * 0.1
    w2 = jax.random.normal(k_w2, (Cout, Cout, 3, 3), jnp.float32) * 0.1
    b2 = jax.random.normal(k_b2, (Cout,), jnp.float32) * 0.1
    w3 = jax.random.normal(k_w3, (Cout, Cout, 3, 3), jnp.float32) * 0.1
    b3 = jax.random.normal(k_b3, (Cout,), jnp.float32) * 0.1

    out = triple_conv_lr(x, w1, b1, w2, b2, w3, b3)
    out = jax.block_until_ready(out)

    ref = _reference(x, w1, b1, w2, b2, w3, b3)
    assert out.shape == (B, Cout, H, W)
    assert jnp.allclose(out, ref, atol=5e-4, rtol=5e-4), "mismatch vs reference"

    print("KERNEL_OK")
</pallas_src>

<mosaic_0001>
module attributes {stable_mosaic.version = 11 : i64} {
  func.func @kernel(%arg0: i32, %arg1: memref<8x512xf32, #tpu.memory_space<vmem>>, %arg2: memref<3x8x80xf32, #tpu.memory_space<vmem>>, %arg3: memref<8x512xf32, #tpu.memory_space<vmem>>, %arg4: memref<8x512xf32, #tpu.memory_space<vmem>>, %arg5: memref<80x512xf32, #tpu.memory_space<vmem>>) attributes {dimension_semantics = [#tpu.dimension_semantics<parallel>], iteration_bounds = array<i64: 1>, scalar_prefetch = 0 : i64, scratch_operands = 1 : i64, tpu.core_type = #tpu.core_type<tc>, window_params = [{transform_indices = @transform_0, window_bounds = array<i64: 8, 512>}, {pipeline_mode = #tpu.pipeline_mode<synchronous>, transform_indices = @transform_1, window_bounds = array<i64: 3, 8, 80>}, {pipeline_mode = #tpu.pipeline_mode<synchronous>, transform_indices = @transform_2, window_bounds = array<i64: 8, 512>}, {transform_indices = @transform_3, window_bounds = array<i64: 8, 512>}]} {
    %c0_i32 = arith.constant 0 : i32
    %0 = arith.cmpi eq, %arg0, %c0_i32 : i32
    %1 = arith.extui %0 : i1 to i32
    %c0_i32_0 = arith.constant 0 : i32
    %2 = arith.cmpi ne, %1, %c0_i32_0 : i32
    scf.if %2 {
      %149 = tpu.iota {dimensions = array<i32: 0>} : vector<80x512xi32>
      %c79_i32 = arith.constant 79 : i32
      %150 = vector.broadcast %c79_i32 : i32 to vector<80x512xi32>
      %151 = arith.cmpi eq, %149, %150 : vector<80x512xi32>
      %152 = arith.extui %151 : vector<80x512xi1> to vector<80x512xi32>
      %153 = arith.sitofp %152 : vector<80x512xi32> to vector<80x512xf32>
      %c0_127 = arith.constant 0 : index
      %c0_128 = arith.constant 0 : index
      %154 = vector.load %arg5[%c0_127, %c0_128] : memref<80x512xf32, #tpu.memory_space<vmem>>, vector<80x512xf32>
      tpu.vector_store %arg5[%c0_127, %c0_128], %153 {strides = array<i32>} : memref<80x512xf32, #tpu.memory_space<vmem>>, vector<80x512xf32>,
    } else {
    }
    %c0 = arith.constant 0 : index
    %c0_1 = arith.constant 0 : index
    %3 = vector.load %arg1[%c0, %c0_1] : memref<8x512xf32, #tpu.memory_space<vmem>>, vector<8x512xf32>
    %c17_i32 = arith.constant 17 : i32
    %4 = tpu.dynamic_rotate %3 by %c17_i32 dim 1 : vector<8x512xf32>, i32 -> vector<8x512xf32>
    %c0_2 = arith.constant 0 : index
    %c0_3 = arith.constant 0 : index
    %5 = vector.load %arg3[%c0_2, %c0_3] : memref<8x512xf32, #tpu.memory_space<vmem>>, vector<1x512xf32>
    %6 = vector.broadcast %5 : vector<1x512xf32> to vector<8x512xf32>
    %7 = arith.mulf %4, %6 : vector<8x512xf32>
    %c0_4 = arith.constant 0 : index
    %c0_5 = arith.constant 0 : index
    %8 = vector.load %arg5[%c0_4, %c0_5] : memref<80x512xf32, #tpu.memory_space<vmem>>, vector<8x512xf32>
    tpu.vector_store %arg5[%c0_4, %c0_5], %7 {strides = array<i32>} : memref<80x512xf32, #tpu.memory_space<vmem>>, vector<8x512xf32>,
    %c16_i32 = arith.constant 16 : i32
    %9 = tpu.dynamic_rotate %3 by %c16_i32 dim 1 : vector<8x512xf32>, i32 -> vector<8x512xf32>
    %c1 = arith.constant 1 : index
    %c0_6 = arith.constant 0 : index
    %10 = vector.load %arg3[%c1, %c0_6] : memref<8x512xf32, #tpu.memory_space<vmem>>, vector<1x512xf32>
    %11 = vector.broadcast %10 : vector<1x512xf32> to vector<8x512xf32>
    %12 = arith.mulf %9, %11 : vector<8x512xf32>
    %c8 = arith.constant 8 : index
    %c0_7 = arith.constant 0 : index
    %13 = vector.load %arg5[%c8, %c0_7] : memref<80x512xf32, #tpu.memory_space<vmem>>, vector<8x512xf32>
    tpu.vector_store %arg5[%c8, %c0_7], %12 {strides = array<i32>} : memref<80x512xf32, #tpu.memory_space<vmem>>, vector<8x512xf32>,
    %c15_i32 = arith.constant 15 : i32
    %14 = tpu.dynamic_rotate %3 by %c15_i32 dim 1 : vector<8x512xf32>, i32 -> vector<8x512xf32>
    %c2 = arith.constant 2 : index
    %c0_8 = arith.constant 0 : index
    %15 = vector.load %arg3[%c2, %c0_8] : memref<8x512xf32, #tpu.memory_space<vmem>>, vector<1x512xf32>
    %16 = vector.broadcast %15 : vector<1x512xf32> to vector<8x512xf32>
    %17 = arith.mulf %14, %16 : vector<8x512xf32>
    %c16 = arith.constant 16 : index
    %c0_9 = arith.constant 0 : index
    %18 = vector.load %arg5[%c16, %c0_9] : memref<80x512xf32, #tpu.memory_space<vmem>>, vector<8x512xf32>
    tpu.vector_store %arg5[%c16, %c0_9], %17 {strides = array<i32>} : memref<80x512xf32, #tpu.memory_space<vmem>>, vector<8x512xf32>,
    %c1_i32 = arith.constant 1 : i32
    %19 = tpu.dynamic_rotate %3 by %c1_i32 dim 1 : vector<8x512xf32>, i32 -> vector<8x512xf32>
    %c3 = arith.constant 3 : index
    %c0_10 = arith.constant 0 : index
    %20 = vector.load %arg3[%c3, %c0_10] : memref<8x512xf32, #tpu.memory_space<vmem>>, vector<1x512xf32>
    %21 = vector.broadcast %20 : vector<1x512xf32> to vector<8x512xf32>
    %22 = arith.mulf %19, %21 : vector<8x512xf32>
    %c24 = arith.constant 24 : index
    %c0_11 = arith.constant 0 : index
    %23 = vector.load %arg5[%c24, %c0_11] : memref<80x512xf32, #tpu.memory_space<vmem>>, vector<8x512xf32>
    tpu.vector_store %arg5[%c24, %c0_11], %22 {strides = array<i32>} : memref<80x512xf32, #tpu.memory_space<vmem>>, vector<8x512xf32>,
    %c32 = arith.constant 32 : index
    %c0_12 = arith.constant 0 : index
    %24 = vector.load %arg5[%c32, %c0_12] : memref<80x512xf32, #tpu.memory_space<vmem>>, vector<8x512xf32>
    tpu.vector_store %arg5[%c32, %c0_12], %3 {strides = array<i32>} : memref<80x512xf32, #tpu.memory_space<vmem>>, vector<8x512xf32>,
    %c511_i32 = arith.constant 511 : i32
    %25 = tpu.dynamic_rotate %3 by %c511_i32 dim 1 : vector<8x512xf32>, i32 -> vector<8x512xf32>
    %c4 = arith.constant 4 : index
    %c0_13 = arith.constant 0 : index
    %26 = vector.load %arg3[%c4, %c0_13] : memref<8x512xf32, #tpu.memory_space<vmem>>, vector<1x512xf32>
    %27 = vector.broadcast %26 : vector<1x512xf32> to vector<8x512xf32>
    %28 = arith.mulf %25, %27 : vector<8x512xf32>
    %c40 = arith.constant 40 : index
    %c0_14 = arith.constant 0 : index
    %29 = vector.load %arg5[%c40, %c0_14] : memref<80x512xf32, #tpu.memory_space<vmem>>, vector<8x512xf32>
    tpu.vector_store %arg5[%c40, %c0_14], %28 {strides = array<i32>} : memref<80x512xf32, #tpu.memory_space<vmem>>, vector<8x512xf32>,
    %c497_i32 = arith.constant 497 : i32
    %30 = tpu.dynamic_rotate %3 by %c497_i32 dim 1 : vector<8x512xf32>, i32 -> vector<8x512xf32>
    %c5 = arith.constant 5 : index
    %c0_15 = arith.constant 0 : index
    %31 = vector.load %arg3[%c5, %c0_15] : memref<8x512xf32, #tpu.memory_space<vmem>>, vector<1x512xf32>
    %32 = vector.broadcast %31 : vector<1x512xf32> to vector<8x512xf32>
    %33 = arith.mulf %30, %32 : vector<8x512xf32>
    %c48 = arith.constant 48 : index
    %c0_16 = arith.constant 0 : index
    %34 = vector.load %arg5[%c48, %c0_16] : memref<80x512xf32, #tpu.memory_space<vmem>>, vector<8x512xf32>
    tpu.vector_store %arg5[%c48, %c0_16], %33 {strides = array<i32>} : memref<80x512xf32, #tpu.memory_space<vmem>>, vector<8x512xf32>,
    %c496_i32 = arith.constant 496 : i32
    %35 = tpu.dynamic_rotate %3 by %c496_i32 dim 1 : vector<8x512xf32>, i32 -> vector<8x512xf32>
    %c6 = arith.constant 6 : index
    %c0_17 = arith.constant 0 : index
    %36 = vector.load %arg3[%c6, %c0_17] : memref<8x512xf32, #tpu.memory_space<vmem>>, vector<1x512xf32>
    %37 = vector.broadcast %36 : vector<1x512xf32> to vector<8x512xf32>
    %38 = arith.mulf %35, %37 : vector<8x512xf32>
    %c56 = arith.constant 56 : index
    %c0_18 = arith.constant 0 : index
    %39 = vector.load %arg5[%c56, %c0_18] : memref<80x512xf32, #tpu.memory_space<vmem>>, vector<8x512xf32>
    tpu.vector_store %arg5[%c56, %c0_18], %38 {strides = array<i32>} : memref<80x512xf32, #tpu.memory_space<vmem>>, vector<8x512xf32>,
    %c495_i32 = arith.constant 495 : i32
    %40 = tpu.dynamic_rotate %3 by %c495_i32 dim 1 : vector<8x512xf32>, i32 -> vector<8x512xf32>
    %c7 = arith.constant 7 : index
    %c0_19 = arith.constant 0 : index
    %41 = vector.load %arg3[%c7, %c0_19] : memref<8x512xf32, #tpu.memory_space<vmem>>, vector<1x512xf32>
    %42 = vector.broadcast %41 : vector<1x512xf32> to vector<8x512xf32>
    %43 = arith.mulf %40, %42 : vector<8x512xf32>
    %c64 = arith.constant 64 : index
    %c0_20 = arith.constant 0 : index
    %44 = vector.load %arg5[%c64, %c0_20] : memref<80x512xf32, #tpu.memory_space<vmem>>, vector<8x512xf32>
    tpu.vector_store %arg5[%c64, %c0_20], %43 {strides = array<i32>} : memref<80x512xf32, #tpu.memory_space<vmem>>, vector<8x512xf32>,
    %c0_21 = arith.constant 0 : index
    %c0_22 = arith.constant 0 : index
    %c0_23 = arith.constant 0 : index
    %45 = vector.load %arg2[%c0_21, %c0_22, %c0_23] : memref<3x8x80xf32, #tpu.memory_space<vmem>>, vector<1x8x80xf32>
    %46 = vector.shape_cast %45 : vector<1x8x80xf32> to vector<8x80xf32>
    %c0_24 = arith.constant 0 : index
    %c0_25 = arith.constant 0 : index
    %47 = vector.load %arg5[%c0_24, %c0_25] : memref<80x512xf32, #tpu.memory_space<vmem>>, vector<80x512xf32>
    %cst = arith.constant dense<0.000000e+00> : vector<8x512xf32>
    %48 = tpu.matmul %46, %47, %cst {dimension_numbers = #tpu.dot_dimension_numbers<[1], [0], [0], [1], [0, 0, 1, 1], [], []>} : vector<8x80xf32>, vector<80x512xf32>, vector<8x512xf32> -> vector<8x512xf32>
    %cst_26 = arith.constant 1.000000e-01 : f32
    %49 = vector.broadcast %cst_26 : f32 to vector<8x512xf32>
    %50 = arith.mulf %49, %48 : vector<8x512xf32>
    %51 = arith.maximumf %48, %50 : vector<8x512xf32>
    %c17_i32_27 = arith.constant 17 : i32
    %52 = tpu.dynamic_rotate %51 by %c17_i32_27 dim 1 : vector<8x512xf32>, i32 -> vector<8x512xf32>
    %c0_28 = arith.constant 0 : index
    %c0_29 = arith.constant 0 : index
    %53 = vector.load %arg3[%c0_28, %c0_29] : memref<8x512xf32, #tpu.memory_space<vmem>>, vector<1x512xf32>
    %54 = vector.broadcast %53 : vector<1x512xf32> to vector<8x512xf32>
    %55 = arith.mulf %52, %54 : vector<8x512xf32>
    %c0_30 = arith.constant 0 : index
    %c0_31 = arith.constant 0 : index
    %56 = vector.load %arg5[%c0_30, %c0_31] : memref<80x512xf32, #tpu.memory_space<vmem>>, vector<8x512xf32>
    tpu.vector_store %arg5[%c0_30, %c0_31], %55 {strides = array<i32>} : memref<80x512xf32, #tpu.memory_space<vmem>>, vector<8x512xf32>,
    %c16_i32_32 = arith.constant 16 : i32
    %57 = tpu.dynamic_rotate %51 by %c16_i32_32 dim 1 : vector<8x512xf32>, i32 -> vector<8x512xf32>
    %c1_33 = arith.constant 1 : index
    %c0_34 = arith.constant 0 : index
    %58 = vector.load %arg3[%c1_33, %c0_34] : memref<8x512xf32, #tpu.memory_space<vmem>>, vector<1x512xf32>
    %59 = vector.broadcast %58 : vector<1x512xf32> to vector<8x512xf32>
    %60 = arith.mulf %57, %59 : vector<8x512xf32>
    %c8_35 = arith.constant 8 : index
    %c0_36 = arith.constant 0 : index
    %61 = vector.load %arg5[%c8_35, %c0_36] : memref<80x512xf32, #tpu.memory_space<vmem>>, vector<8x512xf32>
    tpu.vector_store %arg5[%c8_35, %c0_36], %60 {strides = array<i32>} : memref<80x512xf32, #tpu.memory_space<vmem>>, vector<8x512xf32>,
    %c15_i32_37 = arith.constant 15 : i32
    %62 = tpu.dynamic_rotate %51 by %c15_i32_37 dim 1 : vector<8x512xf32>, i32 -> vector<8x512xf32>
    %c2_38 = arith.constant 2 : index
    %c0_39 = arith.constant 0 : index
    %63 = vector.load %arg3[%c2_38, %c0_39] : memref<8x512xf32, #tpu.memory_space<vmem>>, vector<1x512xf32>
    %64 = vector.broadcast %63 : vector<1x512xf32> to vector<8x512xf32>
    %65 = arith.mulf %62, %64 : vector<8x512xf32>
    %c16_40 = arith.constant 16 : index
    %c0_41 = arith.constant 0 : index
    %66 = vector.load %arg5[%c16_40, %c0_41] : memref<80x512xf32, #tpu.memory_space<vmem>>, vector<8x512xf32>
    tpu.vector_store %arg5[%c16_40, %c0_41], %65 {strides = array<i32>} : memref<80x512xf32, #tpu.memory_space<vmem>>, vector<8x512xf32>,
    %c1_i32_42 = arith.constant 1 : i32
    %67 = tpu.dynamic_rotate %51 by %c1_i32_42 dim 1 : vector<8x512xf32>, i32 -> vector<8x512xf32>
    %c3_43 = arith.constant 3 : index
    %c0_44 = arith.constant 0 : index
    %68 = vector.load %arg3[%c3_43, %c0_44] : memref<8x512xf32, #tpu.memory_space<vmem>>, vector<1x512xf32>
    %69 = vector.broadcast %68 : vector<1x512xf32> to vector<8x512xf32>
    %70 = arith.mulf %67, %69 : vector<8x512xf32>
    %c24_45 = arith.constant 24 : index
    %c0_46 = arith.constant 0 : index
    %71 = vector.load %arg5[%c24_45, %c0_46] : memref<80x512xf32, #tpu.memory_space<vmem>>, vector<8x512xf32>
    tpu.vector_store %arg5[%c24_45, %c0_46], %70 {strides = array<i32>} : memref<80x512xf32, #tpu.memory_space<vmem>>, vector<8x512xf32>,
    %c32_47 = arith.constant 32 : index
    %c0_48 = arith.constant 0 : index
    %72 = vector.load %arg5[%c32_47, %c0_48] : memref<80x512xf32, #tpu.memory_space<vmem>>, vector<8x512xf32>
    tpu.vector_store %arg5[%c32_47, %c0_48], %51 {strides = array<i32>} : memref<80x512xf32, #tpu.memory_space<vmem>>, vector<8x512xf32>,
    %c511_i32_49 = arith.constant 511 : i32
    %73 = tpu.dynamic_rotate %51 by %c511_i32_49 dim 1 : vector<8x512xf32>, i32 -> vector<8x512xf32>
    %c4_50 = arith.constant 4 : index
    %c0_51 = arith.constant 0 : index
    %74 = vector.load %arg3[%c4_50, %c0_51] : memref<8x512xf32, #tpu.memory_space<vmem>>, vector<1x512xf32>
    %75 = vector.broadcast %74 : vector<1x512xf32> to vector<8x512xf32>
    %76 = arith.mulf %73, %75 : vector<8x512xf32>
    %c40_52 = arith.constant 40 : index
    %c0_53 = arith.constant 0 : index
    %77 = vector.load %arg5[%c40_52, %c0_53] : memref<80x512xf32, #tpu.memory_space<vmem>>, vector<8x512xf32>
    tpu.vector_store %arg5[%c40_52, %c0_53], %76 {strides = array<i32>} : memref<80x512xf32, #tpu.memory_space<vmem>>, vector<8x512xf32>,
    %c497_i32_54 = arith.constant 497 : i32
    %78 = tpu.dynamic_rotate %51 by %c497_i32_54 dim 1 : vector<8x512xf32>, i32 -> vector<8x512xf32>
    %c5_55 = arith.constant 5 : index
    %c0_56 = arith.constant 0 : index
    %79 = vector.load %arg3[%c5_55, %c0_56] : memref<8x512xf32, #tpu.memory_space<vmem>>, vector<1x512xf32>
    %80 = vector.broadcast %79 : vector<1x512xf32> to vector<8x512xf32>
    %81 = arith.mulf %78, %80 : vector<8x512xf32>
    %c48_57 = arith.constant 48 : index
    %c0_58 = arith.constant 0 : index
    %82 = vector.load %arg5[%c48_57, %c0_58] : memref<80x512xf32, #tpu.memory_space<vmem>>, vector<8x512xf32>
    tpu.vector_store %arg5[%c48_57, %c0_58], %81 {strides = array<i32>} : memref<80x512xf32, #tpu.memory_space<vmem>>, vector<8x512xf32>,
    %c496_i32_59 = arith.constant 496 : i32
    %83 = tpu.dynamic_rotate %51 by %c496_i32_59 dim 1 : vector<8x512xf32>, i32 -> vector<8x512xf32>
    %c6_60 = arith.constant 6 : index
    %c0_61 = arith.constant 0 : index
    %84 = vector.load %arg3[%c6_60, %c0_61] : memref<8x512xf32, #tpu.memory_space<vmem>>, vector<1x512xf32>
    %85 = vector.broadcast %84 : vector<1x512xf32> to vector<8x512xf32>
    %86 = arith.mulf %83, %85 : vector<8x512xf32>
    %c56_62 = arith.constant 56 : index
    %c0_63 = arith.constant 0 : index
    %87 = vector.load %arg5[%c56_62, %c0_63] : memref<80x512xf32, #tpu.memory_space<vmem>>, vector<8x512xf32>
    tpu.vector_store %arg5[%c56_62, %c0_63], %86 {strides = array<i32>} : memref<80x512xf32, #tpu.memory_space<vmem>>, vector<8x512xf32>,
    %c495_i32_64 = arith.constant 495 : i32
    %88 = tpu.dynamic_rotate %51 by %c495_i32_64 dim 1 : vector<8x512xf32>, i32 -> vector<8x512xf32>
    %c7_65 = arith.constant 7 : index
    %c0_66 = arith.constant 0 : index
    %89 = vector.load %arg3[%c7_65, %c0_66] : memref<8x512xf32, #tpu.memory_space<vmem>>, vector<1x512xf32>
    %90 = vector.broadcast %89 : vector<1x512xf32> to vector<8x512xf32>
    %91 = arith.mulf %88, %90 : vector<8x512xf32>
    %c64_67 = arith.constant 64 : index
    %c0_68 = arith.constant 0 : index
    %92 = vector.load %arg5[%c64_67, %c0_68] : memref<80x512xf32, #tpu.memory_space<vmem>>, vector<8x512xf32>
    tpu.vector_store %arg5[%c64_67, %c0_68], %91 {strides = array<i32>} : memref<80x512xf32, #tpu.memory_space<vmem>>, vector<8x512xf32>,
    %c1_69 = arith.constant 1 : index
    %c0_70 = arith.constant 0 : index
    %c0_71 = arith.constant 0 : index
    %93 = vector.load %arg2[%c1_69, %c0_70, %c0_71] : memref<3x8x80xf32, #tpu.memory_space<vmem>>, vector<1x8x80xf32>
    %94 = vector.shape_cast %93 : vector<1x8x80xf32> to vector<8x80xf32>
    %c0_72 = arith.constant 0 : index
    %c0_73 = arith.constant 0 : index
    %95 = vector.load %arg5[%c0_72, %c0_73] : memref<80x512xf32, #tpu.memory_space<vmem>>, vector<80x512xf32>
    %cst_74 = arith.constant dense<0.000000e+00> : vector<8x512xf32>
    %96 = tpu.matmul %94, %95, %cst_74 {dimension_numbers = #tpu.dot_dimension_numbers<[1], [0], [0], [1], [0, 0, 1, 1], [], []>} : vector<8x80xf32>, vector<80x512xf32>, vector<8x512xf32> -> vector<8x512xf32>
    %cst_75 = arith.constant 1.000000e-01 : f32
    %97 = vector.broadcast %cst_75 : f32 to vector<8x512xf32>
    %98 = arith.mulf %97, %96 : vector<8x512xf32>
    %99 = arith.maximumf %96, %98 : vector<8x512xf32>
    %c17_i32_76 = arith.constant 17 : i32
    %100 = tpu.dynamic_rotate %99 by %c17_i32_76 dim 1 : vector<8x512xf32>, i32 -> vector<8x512xf32>
    %c0_77 = arith.constant 0 : index
    %c0_78 = arith.constant 0 : index
    %101 = vector.load %arg3[%c0_77, %c0_78] : memref<8x512xf32, #tpu.memory_space<vmem>>, vector<1x512xf32>
    %102 = vector.broadcast %101 : vector<1x512xf32> to vector<8x512xf32>
    %103 = arith.mulf %100, %102 : vector<8x512xf32>
    %c0_79 = arith.constant 0 : index
    %c0_80 = arith.constant 0 : index
    %104 = vector.load %arg5[%c0_79, %c0_80] : memref<80x512xf32, #tpu.memory_space<vmem>>, vector<8x512xf32>
    tpu.vector_store %arg5[%c0_79, %c0_80], %103 {strides = array<i32>} : memref<80x512xf32, #tpu.memory_space<vmem>>, vector<8x512xf32>,
    %c16_i32_81 = arith.constant 16 : i32
    %105 = tpu.dynamic_rotate %99 by %c16_i32_81 dim 1 : vector<8x512xf32>, i32 -> vector<8x512xf32>
    %c1_82 = arith.constant 1 : index
    %c0_83 = arith.constant 0 : index
    %106 = vector.load %arg3[%c1_82, %c0_83] : memref<8x512xf32, #tpu.memory_space<vmem>>, vector<1x512xf32>
    %107 = vector.broadcast %106 : vector<1x512xf32> to vector<8x512xf32>
    %108 = arith.mulf %105, %107 : vector<8x512xf32>
    %c8_84 = arith.constant 8 : index
    %c0_85 = arith.constant 0 : index
    %109 = vector.load %arg5[%c8_84, %c0_85] : memref<80x512xf32, #tpu.memory_space<vmem>>, vector<8x512xf32>
    tpu.vector_store %arg5[%c8_84, %c0_85], %108 {strides = array<i32>} : memref<80x512xf32, #tpu.memory_space<vmem>>, vector<8x512xf32>,
    %c15_i32_86 = arith.constant 15 : i32
    %110 = tpu.dynamic_rotate %99 by %c15_i32_86 dim 1 : vector<8x512xf32>, i32 -> vector<8x512xf32>
    %c2_87 = arith.constant 2 : index
    %c0_88 = arith.constant 0 : index
    %111 = vector.load %arg3[%c2_87, %c0_88] : memref<8x512xf32, #tpu.memory_space<vmem>>, vector<1x512xf32>
    %112 = vector.broadcast %111 : vector<1x512xf32> to vector<8x512xf32>
    %113 = arith.mulf %110, %112 : vector<8x512xf32>
    %c16_89 = arith.constant 16 : index
    %c0_90 = arith.constant 0 : index
    %114 = vector.load %arg5[%c16_89, %c0_90] : memref<80x512xf32, #tpu.memory_space<vmem>>, vector<8x512xf32>
    tpu.vector_store %arg5[%c16_89, %c0_90], %113 {strides = array<i32>} : memref<80x512xf32, #tpu.memory_space<vmem>>, vector<8x512xf32>,
    %c1_i32_91 = arith.constant 1 : i32
    %115 = tpu.dynamic_rotate %99 by %c1_i32_91 dim 1 : vector<8x512xf32>, i32 -> vector<8x512xf32>
    %c3_92 = arith.constant 3 : index
    %c0_93 = arith.constant 0 : index
    %116 = vector.load %arg3[%c3_92, %c0_93] : memref<8x512xf32, #tpu.memory_space<vmem>>, vector<1x512xf32>
    %117 = vector.broadcast %116 : vector<1x512xf32> to vector<8x512xf32>
    %118 = arith.mulf %115, %117 : vector<8x512xf32>
    %c24_94 = arith.constant 24 : index
    %c0_95 = arith.constant 0 : index
    %119 = vector.load %arg5[%c24_94, %c0_95] : memref<80x512xf32, #tpu.memory_space<vmem>>, vector<8x512xf32>
    tpu.vector_store %arg5[%c24_94, %c0_95], %118 {strides = array<i32>} : memref<80x512xf32, #tpu.memory_space<vmem>>, vector<8x512xf32>,
    %c32_96 = arith.constant 32 : index
    %c0_97 = arith.constant 0 : index
    %120 = vector.load %arg5[%c32_96, %c0_97] : memref<80x512xf32, #tpu.memory_space<vmem>>, vector<8x512xf32>
    tpu.vector_store %arg5[%c32_96, %c0_97], %99 {strides = array<i32>} : memref<80x512xf32, #tpu.memory_space<vmem>>, vector<8x512xf32>,
    %c511_i32_98 = arith.constant 511 : i32
    %121 = tpu.dynamic_rotate %99 by %c511_i32_98 dim 1 : vector<8x512xf32>, i32 -> vector<8x512xf32>
    %c4_99 = arith.constant 4 : index
    %c0_100 = arith.constant 0 : index
    %122 = vector.load %arg3[%c4_99, %c0_100] : memref<8x512xf32, #tpu.memory_space<vmem>>, vector<1x512xf32>
    %123 = vector.broadcast %122 : vector<1x512xf32> to vector<8x512xf32>
    %124 = arith.mulf %121, %123 : vector<8x512xf32>
    %c40_101 = arith.constant 40 : index
    %c0_102 = arith.constant 0 : index
    %125 = vector.load %arg5[%c40_101, %c0_102] : memref<80x512xf32, #tpu.memory_space<vmem>>, vector<8x512xf32>
    tpu.vector_store %arg5[%c40_101, %c0_102], %124 {strides = array<i32>} : memref<80x512xf32, #tpu.memory_space<vmem>>, vector<8x512xf32>,
    %c497_i32_103 = arith.constant 497 : i32
    %126 = tpu.dynamic_rotate %99 by %c497_i32_103 dim 1 : vector<8x512xf32>, i32 -> vector<8x512xf32>
    %c5_104 = arith.constant 5 : index
    %c0_105 = arith.constant 0 : index
    %127 = vector.load %arg3[%c5_104, %c0_105] : memref<8x512xf32, #tpu.memory_space<vmem>>, vector<1x512xf32>
    %128 = vector.broadcast %127 : vector<1x512xf32> to vector<8x512xf32>
    %129 = arith.mulf %126, %128 : vector<8x512xf32>
    %c48_106 = arith.constant 48 : index
    %c0_107 = arith.constant 0 : index
    %130 = vector.load %arg5[%c48_106, %c0_107] : memref<80x512xf32, #tpu.memory_space<vmem>>, vector<8x512xf32>
    tpu.vector_store %arg5[%c48_106, %c0_107], %129 {strides = array<i32>} : memref<80x512xf32, #tpu.memory_space<vmem>>, vector<8x512xf32>,
    %c496_i32_108 = arith.constant 496 : i32
    %131 = tpu.dynamic_rotate %99 by %c496_i32_108 dim 1 : vector<8x512xf32>, i32 -> vector<8x512xf32>
    %c6_109 = arith.constant 6 : index
    %c0_110 = arith.constant 0 : index
    %132 = vector.load %arg3[%c6_109, %c0_110] : memref<8x512xf32, #tpu.memory_space<vmem>>, vector<1x512xf32>
    %133 = vector.broadcast %132 : vector<1x512xf32> to vector<8x512xf32>
    %134 = arith.mulf %131, %133 : vector<8x512xf32>
    %c56_111 = arith.constant 56 : index
    %c0_112 = arith.constant 0 : index
    %135 = vector.load %arg5[%c56_111, %c0_112] : memref<80x512xf32, #tpu.memory_space<vmem>>, vector<8x512xf32>
    tpu.vector_store %arg5[%c56_111, %c0_112], %134 {strides = array<i32>} : memref<80x512xf32, #tpu.memory_space<vmem>>, vector<8x512xf32>,
    %c495_i32_113 = arith.constant 495 : i32
    %136 = tpu.dynamic_rotate %99 by %c495_i32_113 dim 1 : vector<8x512xf32>, i32 -> vector<8x512xf32>
    %c7_114 = arith.constant 7 : index
    %c0_115 = arith.constant 0 : index
    %137 = vector.load %arg3[%c7_114, %c0_115] : memref<8x512xf32, #tpu.memory_space<vmem>>, vector<1x512xf32>
    %138 = vector.broadcast %137 : vector<1x512xf32> to vector<8x512xf32>
    %139 = arith.mulf %136, %138 : vector<8x512xf32>
    %c64_116 = arith.constant 64 : index
    %c0_117 = arith.constant 0 : index
    %140 = vector.load %arg5[%c64_116, %c0_117] : memref<80x512xf32, #tpu.memory_space<vmem>>, vector<8x512xf32>
    tpu.vector_store %arg5[%c64_116, %c0_117], %139 {strides = array<i32>} : memref<80x512xf32, #tpu.memory_space<vmem>>, vector<8x512xf32>,
    %c2_118 = arith.constant 2 : index
    %c0_119 = arith.constant 0 : index
    %c0_120 = arith.constant 0 : index
    %141 = vector.load %arg2[%c2_118, %c0_119, %c0_120] : memref<3x8x80xf32, #tpu.memory_space<vmem>>, vector<1x8x80xf32>
    %142 = vector.shape_cast %141 : vector<1x8x80xf32> to vector<8x80xf32>
    %c0_121 = arith.constant 0 : index
    %c0_122 = arith.constant 0 : index
    %143 = vector.load %arg5[%c0_121, %c0_122] : memref<80x512xf32, #tpu.memory_space<vmem>>, vector<80x512xf32>
    %cst_123 = arith.constant dense<0.000000e+00> : vector<8x512xf32>
    %144 = tpu.matmul %142, %143, %cst_123 {dimension_numbers = #tpu.dot_dimension_numbers<[1], [0], [0], [1], [0, 0, 1, 1], [], []>} : vector<8x80xf32>, vector<80x512xf32>, vector<8x512xf32> -> vector<8x512xf32>
    %cst_124 = arith.constant 1.000000e-01 : f32
    %145 = vector.broadcast %cst_124 : f32 to vector<8x512xf32>
    %146 = arith.mulf %145, %144 : vector<8x512xf32>
    %147 = arith.maximumf %144, %146 : vector<8x512xf32>
    %c0_125 = arith.constant 0 : index
    %c0_126 = arith.constant 0 : index
    %148 = vector.load %arg4[%c0_125, %c0_126] : memref<8x512xf32, #tpu.memory_space<vmem>>, vector<8x512xf32>
    tpu.vector_store %arg4[%c0_125, %c0_126], %147 {strides = array<i32>} : memref<8x512xf32, #tpu.memory_space<vmem>>, vector<8x512xf32>,
    return
  }
  func.func @transform_0(%arg0: i32) -> (i32, i32) {
    %c0_i32 = arith.constant 0 : i32
    %c0_i32_0 = arith.constant 0 : i32
    return %c0_i32, %arg0 : i32, i32
  }
  func.func @transform_1(%arg0: i32) -> (i32, i32, i32) {
    %c0_i32 = arith.constant 0 : i32
    %c0_i32_0 = arith.constant 0 : i32
    %c0_i32_1 = arith.constant 0 : i32
    %c0_i32_2 = arith.constant 0 : i32
    return %c0_i32, %c0_i32_0, %c0_i32_1 : i32, i32, i32
  }
  func.func @transform_2(%arg0: i32) -> (i32, i32) {
    %c0_i32 = arith.constant 0 : i32
    %c0_i32_0 = arith.constant 0 : i32
    %c0_i32_1 = arith.constant 0 : i32
    return %c0_i32, %c0_i32_0 : i32, i32
  }
  func.func @transform_3(%arg0: i32) -> (i32, i32) {
    %c0_i32 = arith.constant 0 : i32
    %c0_i32_0 = arith.constant 0 : i32
    return %c0_i32, %arg0 : i32, i32
  }
}

</mosaic_0001>

<bundles_post_ra>
// kernel: triple_conv_lr.1
= control target key start
LH: loop header
LB: loop body
LE: loop exit
PB: predicated region body
PF: predicated region fallthrough
CT: control target
= control target key end

     0   :  { %s1918_s16 = smov 17   ;;  %s1919_s21 = smov 16   ;;  %v1925_v4 = vmov 0.0   ;;  %v18_v5 = vlaneseq  ;;  %vm1927_vm9 = vmmov 1   ;;  %vm501_vm11 = vcmask 654336   ;;  %s2647_s0 = inlined_call_operand.vmem [shape: f32[8,512], index: 0, kind: input, shape index: {}]   ;;  %s2648_s2 = inlined_call_operand.vmem [shape: f32[8,512], index: 2, kind: input, shape index: {}]   ;;  %s2649_s1 = inlined_call_operand.vmem [shape: f32[3,8,80], index: 1, kind: input, shape index: {}]   ;;  %s2650_s3 = inlined_call_operand.vmem [shape: f32[8,512], index: 3, kind: output, shape index: {}]  }
   0x1   :  { %v1952_v0 = vld [vmem:[%s2647_s0 + $0x10] sm:$0xff]  ;;  %v1957_v1 = vld [vmem:[%s2647_s0] sm:$0xff]  ;;  %v1966_v2 = vld [vmem:[%s2647_s0 + $0x18] sm:$0xff]  ;;  %s1921_s22 = smov 1   ;;  %s1922_s23 = smov 127   ;;  %569 = vmatprep.mubr.f32.mxu0 %v1925_v4  ;;  %640 = vmatprep.mubr.f32.mxu1 %v1925_v4 }
   0x2   :  { %107 = vrot.lane.b32.xlu1 %v1952_v0, %s1918_s16  ;;  %103 = vrot.lane.b32.xlu0 %v1957_v1, %s1918_s16  ;;  %v1971_v3 = vld [vmem:[%s2647_s0 + $0x8] sm:$0xff]  ;;  %s1920_s0 = smov 15   ;;  %s1923_s24 = smov 113   ;;  %v2035_v6 = vshrl.u32 %v18_v5, 7  ;;  %v2037_v9 = vand.u32 127, %v18_v5 }
   0x3   :  { %s1924_s25 = smov 112   ;;  %s1926_s26 = smov 111   ;;  %v118_v11 = vld [vmem:[%s2648_s2] ss:$8 sm:$0xf] }
   0x4   :  { %v2040_v10 = vsub.s32 1, %v2035_v6  ;;  %v1734_v12 = vld [vmem:[%s2648_s2 + $0x1] ss:$8 sm:$0xf]  ;;  %vm113_vm0 = vcmp.lt.s32.totalorder %v2037_v9, 17  ;;  %v2050_v13 = vsub.s32 0, %v2035_v6 }
   0x5   :  { %v2053_v14 = vsub.s32 2, %v2035_v6  ;;  %v2056_v17 = vsub.s32 3, %v2035_v6  ;;  %vm156_vm1 = vcmp.lt.s32.totalorder %v2037_v9, 16  ;;  %v1735_v52 = vld [vmem:[%s2648_s2 + $0x2] ss:$8 sm:$0xf] }
   0x6   :  { %109 = vrot.lane.b32.xlu1 %v1966_v2, %s1918_s16  ;;  %105 = vrot.lane.b32.xlu0 %v1971_v3, %s1918_s16  ;;  %v127_v18 = vrot.slane %v118_v11, %v2040_v10  ;;  %v171_v19 = vrot.slane %v1734_v12, %v2040_v10  ;;  %v123_v21 = vrot.slane %v118_v11, %v2050_v13  ;;  %v1736_v53 = vld [vmem:[%s2648_s2 + $0x3] ss:$8 sm:$0xf]  ;;  %vm200_vm2 = vcmp.lt.s32.totalorder %v2037_v9, 15 }
   0x7   :  { %v131_v22 = vrot.slane %v118_v11, %v2053_v14  ;;  %v167_v25 = vrot.slane %v1734_v12, %v2050_v13  ;;  %v175_v28 = vrot.slane %v1734_v12, %v2053_v14  ;;  %v135_v29 = vrot.slane %v118_v11, %v2056_v17 }
   0x8   :  { %v179_v33 = vrot.slane %v1734_v12, %v2056_v17  ;;  %v215_v56 = vrot.slane %v1735_v52, %v2040_v10  ;;  %vm244_vm3 = vcmp.lt.s32.totalorder %v2037_v9, 1  ;;  %v259_v57 = vrot.slane %v1736_v53, %v2040_v10 }
   0x9   :  { %v211_v59 = vrot.slane %v1735_v52, %v2050_v13  ;;  %v219_v60 = vrot.slane %v1735_v52, %v2053_v14  ;;  %v223_v61 = vrot.slane %v1735_v52, %v2056_v17  ;;  %v263_v11 = vrot.slane %v1736_v53, %v2053_v14 }
   0xa   :  { %150 = vrot.lane.b32.xlu1 %v1971_v3, %s1919_s21  ;;  %148 = vrot.lane.b32.xlu0 %v1957_v1, %s1919_s21  ;;  %vm292_vm4 = vcmp.lt.s32.totalorder %v2037_v9, 127  ;;  %vm380_vm5 = vcmp.lt.s32.totalorder %v2037_v9, 112  ;;  %vm336_vm6 = vcmp.lt.s32.totalorder %v2037_v9, 113  ;;  %vm424_vm7 = vcmp.lt.s32.totalorder %v2037_v9, 111  ;;  %v1760_v9 = vld [vmem:[%s2649_s1 + $0x10] sm:$0xff] }
   0xe   :  { %154 = vrot.lane.b32.xlu1 %v1966_v2, %s1919_s21  ;;  %152 = vrot.lane.b32.xlu0 %v1952_v0, %s1919_s21 }
  0x12   :  { %194 = vrot.lane.b32.xlu1 %v1971_v3, %s1920_s0  ;;  %192 = vrot.lane.b32.xlu0 %v1957_v1, %s1920_s0 }
  0x16   :  { %198 = vrot.lane.b32.xlu1 %v1966_v2, %s1920_s0  ;;  %196 = vrot.lane.b32.xlu0 %v1952_v0, %s1920_s0 }
  0x1a   :  { %238 = vrot.lane.b32.xlu1 %v1971_v3, %s1921_s22  ;;  %236 = vrot.lane.b32.xlu0 %v1957_v1, %s1921_s22 }
  0x1e   :  { %242 = vrot.lane.b32.xlu1 %v1966_v2, %s1921_s22  ;;  %240 = vrot.lane.b32.xlu0 %v1952_v0, %s1921_s22 }
  0x22   :  { %286 = vrot.lane.b32.xlu1 %v1971_v3, %s1922_s23  ;;  %284 = vrot.lane.b32.xlu0 %v1957_v1, %s1922_s23 }
  0x26   :  { %290 = vrot.lane.b32.xlu1 %v1966_v2, %s1922_s23  ;;  %288 = vrot.lane.b32.xlu0 %v1952_v0, %s1922_s23 }
  0x2a   :  { %330 = vrot.lane.b32.xlu1 %v1971_v3, %s1923_s24  ;;  %328 = vrot.lane.b32.xlu0 %v1957_v1, %s1923_s24 }
  0x2e   :  { %334 = vrot.lane.b32.xlu1 %v1966_v2, %s1923_s24  ;;  %332 = vrot.lane.b32.xlu0 %v1952_v0, %s1923_s24 }
  0x32   :  { %374 = vrot.lane.b32.xlu1 %v1971_v3, %s1924_s25  ;;  %372 = vrot.lane.b32.xlu0 %v1957_v1, %s1924_s25 }
  0x36   :  { %378 = vrot.lane.b32.xlu1 %v1966_v2, %s1924_s25  ;;  %376 = vrot.lane.b32.xlu0 %v1952_v0, %s1924_s25 }
  0x3a   :  { %418 = vrot.lane.b32.xlu1 %v1971_v3, %s1926_s26  ;;  %416 = vrot.lane.b32.xlu0 %v1957_v1, %s1926_s26 }
  0x3e   :  { %422 = vrot.lane.b32.xlu1 %v1966_v2, %s1926_s26  ;;  %420 = vrot.lane.b32.xlu0 %v1952_v0, %s1926_s26 }
  0x74   :  { %v108_v7 = vpop.permute.xlu1 %107  ;;  %v104_v8 = vpop.permute.xlu0 %103 }
  0x78   :  { %v110_v15 = vpop.permute.xlu1 %109  ;;  %v106_v16 = vpop.permute.xlu0 %105 }
  0x79   :  { %v116_v20 = vsel %vm113_vm0, %v104_v8, %v106_v16  ;;  %v117_v26 = vsel %vm113_vm0, %v110_v15, %v104_v8  ;;  %v115_v30 = vsel %vm113_vm0, %v106_v16, %v108_v7  ;;  %v114_v34 = vsel %vm113_vm0, %v108_v7, %v110_v15 }
  0x7a   :  { %v141_v31 = vmul.f32 %v127_v18, %v116_v20  ;;  %v140_v35 = vmul.f32 %v123_v21, %v117_v26  ;;  %v142_v39 = vmul.f32 %v131_v22, %v115_v30  ;;  %v143_v45 = vmul.f32 %v135_v29, %v114_v34 }
  0x7b   :  { %v255_v8 = vrot.slane %v1736_v53, %v2050_v13  ;;  %v267_v18 = vrot.slane %v1736_v53, %v2056_v17 }
  0x7c   :  { %v151_v23 = vpop.permute.xlu1 %150  ;;  %v149_v24 = vpop.permute.xlu0 %148 }
  0x7d   :  { %v159_v27 = vsel %vm156_vm1, %v149_v24, %v151_v23 }
  0x7e   :  { %v185_v32 = vmul.f32 %v171_v19, %v159_v27 }
  0x80   :  { %v155_v36 = vpop.permute.xlu1 %154  ;;  %v153_v37 = vpop.permute.xlu0 %152  ;;  %v1775_v38 = vpack.c.bf16 %v185_v32, %v141_v31  ;;  %v1737_v32 = vld [vmem:[%s2648_s2 + $0x4] ss:$8 sm:$0xf] }
  0x81   :  { %v160_v40 = vsel %vm156_vm1, %v155_v36, %v149_v24  ;;  %v157_v41 = vsel %vm156_vm1, %v153_v37, %v155_v36  ;;  %v158_v42 = vsel %vm156_vm1, %v151_v23, %v153_v37 }
  0x82   :  { %v184_v43 = vmul.f32 %v167_v25, %v160_v40  ;;  %v186_v44 = vmul.f32 %v175_v28, %v158_v42  ;;  %1776 = vmatprep.subr.bf16.mxu0 %v1775_v38  ;;  %v187_v46 = vmul.f32 %v179_v33, %v157_v41  ;;  %v303_v38 = vrot.slane %v1737_v32, %v2050_v13 }
  0x83   :  { %v307_v41 = vrot.slane %v1737_v32, %v2040_v10  ;;  %v311_v42 = vrot.slane %v1737_v32, %v2053_v14 }
  0x84   :  { %v195_v47 = vpop.permute.xlu1 %194  ;;  %v193_v48 = vpop.permute.xlu0 %192  ;;  %v1777_v49 = vpack.c.bf16 %v184_v43, %v140_v35  ;;  %v1797_v50 = vpack.c.bf16 %v187_v46, %v143_v45  ;;  %v1799_v51 = vpack.c.bf16 %v186_v44, %v142_v39  ;;  %v315_v39 = vrot.slane %v1737_v32, %v2056_v17  ;;  %v1740_v32 = vld [vmem:[%s2648_s2 + $0x7] ss:$8 sm:$0xf] }
  0x85   :  { %v203_v58 = vsel %vm200_vm2, %v193_v48, %v195_v47 }
  0x86   :  { %1778 = vmatpush1.bf16.msra.mxu0 %v1777_v49  ;;  %1798 = vmatprep.subr.bf16.mxu1 %v1797_v50  ;;  %v229_v12 = vmul.f32 %v215_v56, %v203_v58 }
  0x87   :  { %1800 = vmatpush1.bf16.msra.mxu1 %v1799_v51 }
  0x88   :  { %v199_v54 = vpop.permute.xlu1 %198  ;;  %v197_v55 = vpop.permute.xlu0 %196 }
  0x89   :  { %v204_v5 = vsel %vm200_vm2, %v199_v54, %v193_v48  ;;  %v202_v15 = vsel %vm200_vm2, %v195_v47, %v197_v55  ;;  %v201_v19 = vsel %vm200_vm2, %v197_v55, %v199_v54 }
  0x8a   :  { %v228_v20 = vmul.f32 %v211_v59, %v204_v5  ;;  %v230_v24 = vmul.f32 %v219_v60, %v202_v15  ;;  %v231_v28 = vmul.f32 %v223_v61, %v201_v19  ;;  %v1739_v60 = vld [vmem:[%s2648_s2 + $0x6] ss:$8 sm:$0xf] }
  0x8b   :  { %v399_v15 = vrot.slane %v1739_v60, %v2053_v14 }
  0x8c   :  { %v239_v62 = vpop.permute.xlu1 %238  ;;  %v237_v63 = vpop.permute.xlu0 %236 }
  0x8d   :  { %v247_v7 = vsel %vm244_vm3, %v237_v63, %v239_v62 }
  0x8e   :  { %v273_v16 = vmul.f32 %v259_v57, %v247_v7  ;;  %v391_v7 = vrot.slane %v1739_v60, %v2050_v13 }
  0x90   :  { %v243_v21 = vpop.permute.xlu1 %242  ;;  %v241_v22 = vpop.permute.xlu0 %240  ;;  %v1779_v23 = vpack.c.bf16 %v273_v16, %v229_v12  ;;  %v395_v12 = vrot.slane %v1739_v60, %v2040_v10 }
  0x91   :  { %v248_v25 = vsel %vm244_vm3, %v243_v21, %v237_v63  ;;  %v245_v26 = vsel %vm244_vm3, %v241_v22, %v243_v21  ;;  %v246_v27 = vsel %vm244_vm3, %v239_v62, %v241_v22 }
  0x92   :  { %v272_v29 = vmul.f32 %v255_v8, %v248_v25  ;;  %v274_v30 = vmul.f32 %v263_v11, %v246_v27  ;;  %v275_v31 = vmul.f32 %v267_v18, %v245_v26  ;;  %1780 = vmatprep.subr.bf16.mxu0 %v1779_v23  ;;  %v403_v11 = vrot.slane %v1739_v60, %v2056_v17  ;;  %v460_v60 = vld [vmem:[%s2649_s1] sm:$0xff] }
  0x94   :  { %v287_v33 = vpop.permute.xlu1 %286  ;;  %v285_v34 = vpop.permute.xlu0 %284  ;;  %v1781_v35 = vpack.c.bf16 %v272_v29, %v228_v20  ;;  %v1801_v36 = vpack.c.bf16 %v275_v31, %v231_v28  ;;  %v1803_v37 = vpack.c.bf16 %v274_v30, %v230_v24 }
  0x95   :  { %v295_v40 = vsel %vm292_vm4, %v285_v34, %v287_v33 }
  0x96   :  { %1782 = vmatpush1.bf16.msra.mxu0 %v1781_v35  ;;  %1802 = vmatprep.subr.bf16.mxu1 %v1801_v36  ;;  %v320_v45 = vmul.f32 %v303_v38, %v295_v40  ;;  %v435_v40 = vrot.slane %v1740_v32, %v2050_v13 }
  0x97   :  { %1804 = vmatpush1.bf16.msra.mxu1 %v1803_v37 }
  0x98   :  { %v291_v43 = vpop.permute.xlu1 %290  ;;  %v289_v44 = vpop.permute.xlu0 %288  ;;  %v1785_v57 = vpack.c.bf16 %v320_v45, %v1957_v1  ;;  %v443_v45 = vrot.slane %v1740_v32, %v2053_v14 }
  0x99   :  { %v296_v46 = vsel %vm292_vm4, %v291_v43, %v285_v34  ;;  %v293_v47 = vsel %vm292_vm4, %v289_v44, %v291_v43  ;;  %v294_v48 = vsel %vm292_vm4, %v287_v33, %v289_v44  ;;  %v439_v44 = vrot.slane %v1740_v32, %v2040_v10 }
  0x9a   :  { %v323_v49 = vmul.f32 %v315_v39, %v296_v46  ;;  %v321_v50 = vmul.f32 %v307_v41, %v294_v48  ;;  %v322_v51 = vmul.f32 %v311_v42, %v293_v47  ;;  %v28_v39 = vadd.s32 72, %v2035_v6 }
  0x9b   :  { %v447_v42 = vrot.slane %v1740_v32, %v2056_v17 }
  0x9c   :  { %v331_v52 = vpop.permute.xlu1 %330  ;;  %v329_v53 = vpop.permute.xlu0 %328  ;;  %v1783_v54 = vpack.c.bf16 %v321_v50, %v1971_v3  ;;  %v1805_v55 = vpack.c.bf16 %v323_v49, %v1966_v2  ;;  %v1807_v56 = vpack.c.bf16 %v322_v51, %v1952_v0  ;;  %v1738_v3 = vld [vmem:[%s2648_s2 + $0x5] ss:$8 sm:$0xf]  ;;  %vm38_vm8 = vcmp.eq.s32.totalorder %v28_v39, 79 }
  0x9d   :  { %v359_v0 = vrot.slane %v1738_v3, %v2056_v17  ;;  %v351_v1 = vrot.slane %v1738_v3, %v2040_v10  ;;  %v355_v63 = vrot.slane %v1738_v3, %v2053_v14  ;;  %v347_v16 = vrot.slane %v1738_v3, %v2050_v13  ;;  %vm2184_vm10 = vmpackc.low %vm38_vm8, %vm1927_vm9 }
  0x9e   :  { %1784 = vmatprep.subr.bf16.mxu0 %v1783_v54  ;;  %1806 = vmatprep.subr.bf16.mxu1 %v1805_v55  ;;  %v339_v19 = vsel %vm336_vm6, %v329_v53, %v331_v52  ;;  %v1928_v55 = vmov 1.0  }
  0x9f   :  { %1786 = vmatpush1.bf16.msra.mxu0 %v1785_v57  ;;  %1808 = vmatpush1.bf16.msra.mxu1 %v1807_v56  ;;  %v364_v33 = vmul.f32 %v347_v16, %v339_v19 }
  0xa0   :  { %v335_v58 = vpop.permute.xlu1 %334  ;;  %v333_v59 = vpop.permute.xlu0 %332 }
  0xa1   :  { %v340_v62 = vsel %vm336_vm6, %v335_v58, %v329_v53  ;;  %v338_v5 = vsel %vm336_vm6, %v331_v52, %v333_v59  ;;  %v337_v18 = vsel %vm336_vm6, %v333_v59, %v335_v58 }
  0xa2   :  { %v367_v20 = vmul.f32 %v359_v0, %v340_v62  ;;  %v365_v21 = vmul.f32 %v351_v1, %v338_v5  ;;  %v366_v28 = vmul.f32 %v355_v63, %v337_v18  ;;  %v667_v18 = vld [vmem:[%s2648_s2] ss:$8 sm:$0xf] }
  0xa4   :  { %v375_v2 = vpop.permute.xlu1 %374  ;;  %v373_v61 = vpop.permute.xlu0 %372 }
  0xa5   :  { %v383_v8 = vsel %vm380_vm5, %v373_v61, %v375_v2 }
  0xa6   :  { %v408_v24 = vmul.f32 %v391_v7, %v383_v8 }
  0xa8   :  { %v379_v22 = vpop.permute.xlu1 %378  ;;  %v377_v23 = vpop.permute.xlu0 %376  ;;  %v1789_v41 = vpack.c.bf16 %v408_v24, %v364_v33 }
  0xa9   :  { %v384_v25 = vsel %vm380_vm5, %v379_v22, %v373_v61  ;;  %v381_v26 = vsel %vm380_vm5, %v377_v23, %v379_v22  ;;  %v382_v27 = vsel %vm380_vm5, %v375_v2, %v377_v23  ;;  %v676_v22 = vrot.slane %v667_v18, %v2040_v10 }
  0xaa   :  { %v411_v29 = vmul.f32 %v403_v11, %v384_v25  ;;  %v409_v30 = vmul.f32 %v395_v12, %v382_v27  ;;  %v410_v31 = vmul.f32 %v399_v15, %v381_v26  ;;  %v672_v27 = vrot.slane %v667_v18, %v2050_v13 }
  0xac   :  { %v419_v34 = vpop.permute.xlu1 %418  ;;  %v417_v35 = vpop.permute.xlu0 %416  ;;  %v1787_v36 = vpack.c.bf16 %v409_v30, %v365_v21  ;;  %v1809_v37 = vpack.c.bf16 %v411_v29, %v367_v20  ;;  %v1811_v38 = vpack.c.bf16 %v410_v31, %v366_v28  ;;  %v1743_v20 = vld [vmem:[%s2648_s2 + $0x1] ss:$8 sm:$0xf]  ;;  %v684_v28 = vrot.slane %v667_v18, %v2056_v17 }
  0xad   :  { %v427_v43 = vsel %vm424_vm7, %v417_v35, %v419_v34  ;;  %v718_v23 = vrot.slane %v1743_v20, %v2040_v10  ;;  %v722_v30 = vrot.slane %v1743_v20, %v2053_v14  ;;  %v714_v33 = vrot.slane %v1743_v20, %v2050_v13 }
  0xae   :  { %1788 = vmatprep.subr.bf16.mxu0 %v1787_v36  ;;  %1810 = vmatprep.subr.bf16.mxu1 %v1809_v37  ;;  %v452_v6 = vmul.f32 %v435_v40, %v427_v43 }
  0xaf   :  { %1790 = vmatpush1.bf16.msra.mxu0 %v1789_v41  ;;  %1812 = vmatpush1.bf16.msra.mxu1 %v1811_v38 }
  0xb0   :  { %v423_v46 = vpop.permute.xlu1 %422  ;;  %v421_v47 = vpop.permute.xlu0 %420  ;;  %v1794_v59 = vpack.c.bf16 %v1928_v55, %v452_v6 }
  0xb1   :  { %v428_v48 = vsel %vm424_vm7, %v423_v46, %v417_v35  ;;  %v425_v49 = vsel %vm424_vm7, %v421_v47, %v423_v46  ;;  %v426_v50 = vsel %vm424_vm7, %v419_v34, %v421_v47  ;;  %v726_v34 = vrot.slane %v1743_v20, %v2056_v17 }
  0xb2   :  { %v455_v51 = vmul.f32 %v447_v42, %v428_v48  ;;  %v453_v52 = vmul.f32 %v439_v44, %v426_v50  ;;  %v454_v53 = vmul.f32 %v443_v45, %v425_v49  ;;  %v680_v35 = vrot.slane %v667_v18, %v2053_v14 }
  0xb4   :  { %v1813_v56 = vpack.c.bf16 %v1928_v55, %v455_v51  ;;  %v1791_v57 = vpack.c.bf16 %v1928_v55, %v453_v52  ;;  %v1816_v58 = vpack.c.bf16 %v1928_v55, %v454_v53 }
  0xb6   :  { %1793 = vmatprep.subr.msk.bf16.mxu0 %vm2184_vm10, %v1791_v57  ;;  %1815 = vmatprep.subr.msk.bf16.mxu1 %vm2184_vm10, %v1813_v56  ;;  %v1744_v57 = vld [vmem:[%s2648_s2 + $0x2] ss:$8 sm:$0xf] }
  0xb7   :  { %1796 = vmatpush1.bf16.msk.msra.mxu0 %vm2184_vm10, %v1794_v59  ;;  %1818 = vmatpush1.bf16.msk.msra.mxu1 %vm2184_vm10, %v1816_v58  ;;  %v1745_v59 = vld [vmem:[%s2648_s2 + $0x3] ss:$8 sm:$0xf] }
  0xb8   :  { %v810_v20 = vrot.slane %v1745_v59, %v2056_v17 }
  0xba   :  { %1741 = vmatmul.mubr.msk.f32.vlgmr.msra.gmra.mrb[0].mxu0 %vm501_vm11, %v460_v60  ;;  %1742 = vmatmul.mubr.msk.f32.vlgmr.msra.gmra.mrb[0].mxu1 %vm501_vm11, %v460_v60 }
  0xbb   :  { %1104 = vmatprep.mubr.f32.mxu0 %v1925_v4  ;;  %1175 = vmatprep.mubr.f32.mxu1 %v1925_v4 }
 0x18d   :  { %v571_v3 = vpop.f32.mrb[0].mxu0  ;;  %v642_v0 = vpop.f32.mrb[0].mxu1 }
 0x18e   :  { %v647_v1 = vmul.f32 0.1, %v571_v3  ;;  %v573_v2 = vpop.f32.mrb[1].mxu0  ;;  %v644_v61 = vpop.f32.mrb[1].mxu1  ;;  %v649_v5 = vmul.f32 0.1, %v642_v0 }
 0x18f   :  { %v648_v62 = vmul.f32 0.1, %v573_v2  ;;  %v650_v8 = vmul.f32 0.1, %v644_v61 }
 0x190   :  { %v2207_v63 = vmax.f32 %v571_v3, %v647_v1  ;;  %v2215_v11 = vmax.f32 %v642_v0, %v649_v5  ;;  %v760_v3 = vrot.slane %v1744_v57, %v2040_v10  ;;  %v802_v0 = vrot.slane %v1745_v59, %v2040_v10 }
 0x191   :  { %v2209_v7 = vmax.f32 %v573_v2, %v648_v62  ;;  %v2217_v12 = vmax.f32 %v644_v61, %v650_v8  ;;  %v756_v62 = vrot.slane %v1744_v57, %v2050_v13  ;;  %v768_v5 = vrot.slane %v1744_v57, %v2056_v17 }
 0x192   :  { %655 = vrot.lane.b32.xlu0 %v2207_v63, %s1918_s16 }
 0x193   :  { %657 = vrot.lane.b32.xlu1 %v2209_v7, %s1918_s16 }
 0x196   :  { %659 = vrot.lane.b32.xlu0 %v2215_v11, %s1918_s16 }
 0x197   :  { %661 = vrot.lane.b32.xlu1 %v2217_v12, %s1918_s16 }
 0x19a   :  { %697 = vrot.lane.b32.xlu0 %v2207_v63, %s1919_s21 }
 0x19b   :  { %699 = vrot.lane.b32.xlu1 %v2209_v7, %s1919_s21 }
 0x19e   :  { %701 = vrot.lane.b32.xlu0 %v2215_v11, %s1919_s21 }
 0x19f   :  { %703 = vrot.lane.b32.xlu1 %v2217_v12, %s1919_s21 }
 0x1a2   :  { %739 = vrot.lane.b32.xlu0 %v2207_v63, %s1920_s0 }
 0x1a3   :  { %741 = vrot.lane.b32.xlu1 %v2209_v7, %s1920_s0 }
 0x1a6   :  { %743 = vrot.lane.b32.xlu0 %v2215_v11, %s1920_s0 }
 0x1a7   :  { %745 = vrot.lane.b32.xlu1 %v2217_v12, %s1920_s0 }
 0x1aa   :  { %781 = vrot.lane.b32.xlu0 %v2207_v63, %s1921_s22 }
 0x1ab   :  { %783 = vrot.lane.b32.xlu1 %v2209_v7, %s1921_s22 }
 0x1ae   :  { %785 = vrot.lane.b32.xlu0 %v2215_v11, %s1921_s22 }
 0x1af   :  { %787 = vrot.lane.b32.xlu1 %v2217_v12, %s1921_s22 }
 0x1b2   :  { %827 = vrot.lane.b32.xlu0 %v2207_v63, %s1922_s23 }
 0x1b3   :  { %829 = vrot.lane.b32.xlu1 %v2209_v7, %s1922_s23 }
 0x1b6   :  { %831 = vrot.lane.b32.xlu0 %v2215_v11, %s1922_s23 }
 0x1b7   :  { %833 = vrot.lane.b32.xlu1 %v2217_v12, %s1922_s23 }
 0x1ba   :  { %869 = vrot.lane.b32.xlu0 %v2207_v63, %s1923_s24 }
 0x1bb   :  { %871 = vrot.lane.b32.xlu1 %v2209_v7, %s1923_s24 }
 0x1be   :  { %873 = vrot.lane.b32.xlu0 %v2215_v11, %s1923_s24 }
 0x1bf   :  { %875 = vrot.lane.b32.xlu1 %v2217_v12, %s1923_s24 }
 0x1c2   :  { %911 = vrot.lane.b32.xlu0 %v2207_v63, %s1924_s25 }
 0x1c3   :  { %913 = vrot.lane.b32.xlu1 %v2209_v7, %s1924_s25 }
 0x1c6   :  { %915 = vrot.lane.b32.xlu0 %v2215_v11, %s1924_s25 }
 0x1c7   :  { %917 = vrot.lane.b32.xlu1 %v2217_v12, %s1924_s25 }
 0x1ca   :  { %953 = vrot.lane.b32.xlu0 %v2207_v63, %s1926_s26 }
 0x1cb   :  { %955 = vrot.lane.b32.xlu1 %v2209_v7, %s1926_s26 }
 0x1ce   :  { %957 = vrot.lane.b32.xlu0 %v2215_v11, %s1926_s26 }
 0x1cf   :  { %959 = vrot.lane.b32.xlu1 %v2217_v12, %s1926_s26 }
 0x204   :  { %v656_v15 = vpop.permute.xlu0 %655 }
 0x205   :  { %v658_v16 = vpop.permute.xlu1 %657 }
 0x206   :  { %v665_v24 = vsel %vm113_vm0, %v656_v15, %v658_v16 }
 0x207   :  { %v690_v31 = vmul.f32 %v676_v22, %v665_v24 }
 0x208   :  { %v660_v19 = vpop.permute.xlu0 %659 }
 0x209   :  { %v662_v21 = vpop.permute.xlu1 %661  ;;  %v664_v39 = vsel %vm113_vm0, %v658_v16, %v660_v19 }
 0x20a   :  { %v663_v36 = vsel %vm113_vm0, %v660_v19, %v662_v21  ;;  %v666_v37 = vsel %vm113_vm0, %v662_v21, %v656_v15  ;;  %v691_v49 = vmul.f32 %v680_v35, %v664_v39  ;;  %v806_v15 = vrot.slane %v1745_v59, %v2053_v14 }
 0x20b   :  { %v689_v46 = vmul.f32 %v672_v27, %v666_v37  ;;  %v692_v47 = vmul.f32 %v684_v28, %v663_v36  ;;  %v798_v19 = vrot.slane %v1745_v59, %v2050_v13  ;;  %v764_v21 = vrot.slane %v1744_v57, %v2053_v14 }
 0x20c   :  { %v698_v25 = vpop.permute.xlu0 %697 }
 0x20d   :  { %v700_v26 = vpop.permute.xlu1 %699 }
 0x20e   :  { %v707_v29 = vsel %vm156_vm1, %v698_v25, %v700_v26 }
 0x20f   :  { %v732_v32 = vmul.f32 %v718_v23, %v707_v29 }
 0x210   :  { %v702_v38 = vpop.permute.xlu0 %701 }
 0x211   :  { %v706_v40 = vsel %vm156_vm1, %v700_v26, %v702_v38  ;;  %v704_v41 = vpop.permute.xlu1 %703  ;;  %v1819_v42 = vpack.c.bf16 %v732_v32, %v690_v31  ;;  %v1746_v32 = vld [vmem:[%s2648_s2 + $0x4] ss:$8 sm:$0xf] }
 0x212   :  { %v733_v43 = vmul.f32 %v722_v30, %v706_v40  ;;  %v705_v44 = vsel %vm156_vm1, %v702_v38, %v704_v41  ;;  %v708_v45 = vsel %vm156_vm1, %v704_v41, %v698_v25  ;;  %v844_v40 = vrot.slane %v1746_v32, %v2050_v13 }
 0x213   :  { %v731_v6 = vmul.f32 %v714_v33, %v708_v45  ;;  %v734_v48 = vmul.f32 %v726_v34, %v705_v44  ;;  %1820 = vmatprep.subr.bf16.mxu0 %v1819_v42  ;;  %v848_v45 = vrot.slane %v1746_v32, %v2040_v10 }
 0x214   :  { %v740_v50 = vpop.permute.xlu0 %739  ;;  %v1843_v56 = vpack.c.bf16 %v733_v43, %v691_v49 }
 0x215   :  { %v1821_v51 = vpack.c.bf16 %v731_v6, %v689_v46  ;;  %v742_v52 = vpop.permute.xlu1 %741  ;;  %v1841_v53 = vpack.c.bf16 %v734_v48, %v692_v47  ;;  %v852_v46 = vrot.slane %v1746_v32, %v2053_v14  ;;  %v856_v47 = vrot.slane %v1746_v32, %v2056_v17 }
 0x216   :  { %v749_v1 = vsel %vm200_vm2, %v740_v50, %v742_v52 }
 0x217   :  { %1822 = vmatpush1.bf16.msra.mxu0 %v1821_v51  ;;  %1842 = vmatprep.subr.bf16.mxu1 %v1841_v53  ;;  %v774_v16 = vmul.f32 %v760_v3, %v749_v1 }
 0x218   :  { %v744_v58 = vpop.permute.xlu0 %743  ;;  %1844 = vmatpush1.bf16.msra.mxu1 %v1843_v56 }
 0x219   :  { %v746_v60 = vpop.permute.xlu1 %745  ;;  %v748_v25 = vsel %vm200_vm2, %v742_v52, %v744_v58 }
 0x21a   :  { %v747_v22 = vsel %vm200_vm2, %v744_v58, %v746_v60  ;;  %v750_v23 = vsel %vm200_vm2, %v746_v60, %v740_v50  ;;  %v775_v37 = vmul.f32 %v764_v21, %v748_v25 }
 0x21b   :  { %v773_v33 = vmul.f32 %v756_v62, %v750_v23  ;;  %v776_v34 = vmul.f32 %v768_v5, %v747_v22  ;;  %v1747_v62 = vld [vmem:[%s2648_s2 + $0x5] ss:$8 sm:$0xf] }
 0x21c   :  { %v782_v2 = vpop.permute.xlu0 %781  ;;  %v890_v5 = vrot.slane %v1747_v62, %v2040_v10  ;;  %v898_v21 = vrot.slane %v1747_v62, %v2056_v17 }
 0x21d   :  { %v784_v61 = vpop.permute.xlu1 %783 }
 0x21e   :  { %v791_v8 = vsel %vm244_vm3, %v782_v2, %v784_v61 }
 0x21f   :  { %v816_v18 = vmul.f32 %v802_v0, %v791_v8 }
 0x220   :  { %v786_v24 = vpop.permute.xlu0 %785 }
 0x221   :  { %v790_v26 = vsel %vm244_vm3, %v784_v61, %v786_v24  ;;  %v788_v27 = vpop.permute.xlu1 %787  ;;  %v1823_v28 = vpack.c.bf16 %v816_v18, %v774_v16  ;;  %v894_v16 = vrot.slane %v1747_v62, %v2053_v14 }
 0x222   :  { %v817_v29 = vmul.f32 %v806_v15, %v790_v26  ;;  %v789_v30 = vsel %vm244_vm3, %v786_v24, %v788_v27  ;;  %v792_v31 = vsel %vm244_vm3, %v788_v27, %v782_v2 }
 0x223   :  { %v815_v35 = vmul.f32 %v798_v19, %v792_v31  ;;  %v818_v36 = vmul.f32 %v810_v20, %v789_v30  ;;  %1824 = vmatprep.subr.bf16.mxu0 %v1823_v28 }
 0x224   :  { %v828_v38 = vpop.permute.xlu0 %827  ;;  %v1847_v43 = vpack.c.bf16 %v817_v29, %v775_v37 }
 0x225   :  { %v1825_v39 = vpack.c.bf16 %v815_v35, %v773_v33  ;;  %v830_v41 = vpop.permute.xlu1 %829  ;;  %v1845_v42 = vpack.c.bf16 %v818_v36, %v776_v34  ;;  %v1749_v35 = vld [vmem:[%s2648_s2 + $0x7] ss:$8 sm:$0xf] }
 0x226   :  { %v837_v44 = vsel %vm292_vm4, %v828_v38, %v830_v41 }
 0x227   :  { %1826 = vmatpush1.bf16.msra.mxu0 %v1825_v39  ;;  %1846 = vmatprep.subr.bf16.mxu1 %v1845_v42  ;;  %v861_v48 = vmul.f32 %v844_v40, %v837_v44  ;;  %v970_v44 = vrot.slane %v1749_v35, %v2050_v13 }
 0x228   :  { %v832_v6 = vpop.permute.xlu0 %831  ;;  %1848 = vmatpush1.bf16.msra.mxu1 %v1847_v43 }
 0x229   :  { %v836_v49 = vsel %vm292_vm4, %v830_v41, %v832_v6  ;;  %v834_v50 = vpop.permute.xlu1 %833  ;;  %v1829_v60 = vpack.c.bf16 %v861_v48, %v2207_v63  ;;  %v978_v48 = vrot.slane %v1749_v35, %v2053_v14 }
 0x22a   :  { %v862_v51 = vmul.f32 %v848_v45, %v836_v49  ;;  %v835_v52 = vsel %vm292_vm4, %v832_v6, %v834_v50  ;;  %v838_v53 = vsel %vm292_vm4, %v834_v50, %v828_v38  ;;  %v974_v6 = vrot.slane %v1749_v35, %v2040_v10 }
 0x22b   :  { %v863_v56 = vmul.f32 %v852_v46, %v835_v52  ;;  %v864_v57 = vmul.f32 %v856_v47, %v838_v53  ;;  %v982_v49 = vrot.slane %v1749_v35, %v2056_v17 }
 0x22c   :  { %v870_v58 = vpop.permute.xlu0 %869  ;;  %v1827_v59 = vpack.c.bf16 %v862_v51, %v2209_v7  ;;  %v1748_v7 = vld [vmem:[%s2648_s2 + $0x6] ss:$8 sm:$0xf] }
 0x22d   :  { %v1851_v3 = vpack.c.bf16 %v863_v56, %v2215_v11  ;;  %v872_v0 = vpop.permute.xlu1 %871  ;;  %v1849_v1 = vpack.c.bf16 %v864_v57, %v2217_v12  ;;  %v886_v11 = vrot.slane %v1747_v62, %v2050_v13  ;;  %v928_v12 = vrot.slane %v1748_v7, %v2050_v13 }
 0x22e   :  { %1828 = vmatprep.subr.bf16.mxu0 %v1827_v59  ;;  %v879_v15 = vsel %vm336_vm6, %v870_v58, %v872_v0  ;;  %v932_v19 = vrot.slane %v1748_v7, %v2040_v10  ;;  %v936_v22 = vrot.slane %v1748_v7, %v2053_v14  ;;  %v940_v23 = vrot.slane %v1748_v7, %v2056_v17 }
 0x22f   :  { %1830 = vmatpush1.bf16.msra.mxu0 %v1829_v60  ;;  %1850 = vmatprep.subr.bf16.mxu1 %v1849_v1  ;;  %v903_v27 = vmul.f32 %v886_v11, %v879_v15 }
 0x230   :  { %v874_v2 = vpop.permute.xlu0 %873  ;;  %1852 = vmatpush1.bf16.msra.mxu1 %v1851_v3 }
 0x231   :  { %v876_v61 = vpop.permute.xlu1 %875  ;;  %v878_v20 = vsel %vm336_vm6, %v872_v0, %v874_v2 }
 0x232   :  { %v877_v24 = vsel %vm336_vm6, %v874_v2, %v876_v61  ;;  %v880_v25 = vsel %vm336_vm6, %v876_v61, %v870_v58  ;;  %v904_v31 = vmul.f32 %v890_v5, %v878_v20  ;;  %v1750_v61 = vld [vmem:[%s2649_s1 + $0x8] sm:$0xff] }
 0x233   :  { %v905_v36 = vmul.f32 %v894_v16, %v877_v24  ;;  %v906_v37 = vmul.f32 %v898_v21, %v880_v25  ;;  %v1753_v24 = vld [vmem:[%s2648_s2 + $0x1] ss:$8 sm:$0xf] }
 0x234   :  { %v912_v63 = vpop.permute.xlu0 %911 }
 0x235   :  { %v914_v8 = vpop.permute.xlu1 %913 }
 0x236   :  { %v921_v18 = vsel %vm380_vm5, %v912_v63, %v914_v8 }
 0x237   :  { %v945_v28 = vmul.f32 %v928_v12, %v921_v18 }
 0x238   :  { %v916_v26 = vpop.permute.xlu0 %915 }
 0x239   :  { %v920_v29 = vsel %vm380_vm5, %v914_v8, %v916_v26  ;;  %v918_v30 = vpop.permute.xlu1 %917  ;;  %v1833_v42 = vpack.c.bf16 %v945_v28, %v903_v27  ;;  %v1253_v27 = vrot.slane %v1753_v24, %v2040_v10 }
 0x23a   :  { %v946_v32 = vmul.f32 %v932_v19, %v920_v29  ;;  %v919_v33 = vsel %vm380_vm5, %v916_v26, %v918_v30  ;;  %v922_v34 = vsel %vm380_vm5, %v918_v30, %v912_v63 }
 0x23b   :  { %v947_v38 = vmul.f32 %v936_v22, %v919_v33  ;;  %v948_v39 = vmul.f32 %v940_v23, %v922_v34  ;;  %v1202_v22 = vld [vmem:[%s2648_s2] ss:$8 sm:$0xf]  ;;  %v1257_v34 = vrot.slane %v1753_v24, %v2053_v14 }
 0x23c   :  { %v954_v40 = vpop.permute.xlu0 %953  ;;  %v1831_v41 = vpack.c.bf16 %v946_v32, %v904_v31  ;;  %v1211_v26 = vrot.slane %v1202_v22, %v2040_v10  ;;  %v1207_v31 = vrot.slane %v1202_v22, %v2050_v13  ;;  %v1219_v32 = vrot.slane %v1202_v22, %v2056_v17 }
 0x23d   :  { %v1855_v43 = vpack.c.bf16 %v947_v38, %v905_v36  ;;  %v956_v45 = vpop.permute.xlu1 %955  ;;  %v1853_v46 = vpack.c.bf16 %v948_v39, %v906_v37  ;;  %v1249_v37 = vrot.slane %v1753_v24, %v2050_v13  ;;  %v1261_v38 = vrot.slane %v1753_v24, %v2056_v17 }
 0x23e   :  { %v963_v47 = vsel %vm424_vm7, %v954_v40, %v956_v45  ;;  %1832 = vmatprep.subr.bf16.mxu0 %v1831_v41  ;;  %v1215_v39 = vrot.slane %v1202_v22, %v2053_v14 }
 0x23f   :  { %1834 = vmatpush1.bf16.msra.mxu0 %v1833_v42  ;;  %1854 = vmatprep.subr.bf16.mxu1 %v1853_v46  ;;  %v987_v51 = vmul.f32 %v970_v44, %v963_v47 }
 0x240   :  { %v958_v50 = vpop.permute.xlu0 %957  ;;  %1856 = vmatpush1.bf16.msra.mxu1 %v1855_v43 }
 0x241   :  { %v962_v52 = vsel %vm424_vm7, %v956_v45, %v958_v50  ;;  %v960_v53 = vpop.permute.xlu1 %959  ;;  %v1838_v0 = vpack.c.bf16 %v1928_v55, %v987_v51 }
 0x242   :  { %v988_v56 = vmul.f32 %v974_v6, %v962_v52  ;;  %v961_v57 = vsel %vm424_vm7, %v958_v50, %v960_v53  ;;  %v964_v58 = vsel %vm424_vm7, %v960_v53, %v954_v40 }
 0x243   :  { %v989_v59 = vmul.f32 %v978_v48, %v961_v57  ;;  %v990_v60 = vmul.f32 %v982_v49, %v964_v58 }
 0x244   :  { %v1835_v3 = vpack.c.bf16 %v1928_v55, %v988_v56 }
 0x245   :  { %v1857_v1 = vpack.c.bf16 %v1928_v55, %v990_v60  ;;  %v1860_v2 = vpack.c.bf16 %v1928_v55, %v989_v59 }
 0x246   :  { %1837 = vmatprep.subr.msk.bf16.mxu0 %vm2184_vm10, %v1835_v3  ;;  %v1754_v3 = vld [vmem:[%s2648_s2 + $0x2] ss:$8 sm:$0xf] }
 0x247   :  { %1840 = vmatpush1.bf16.msk.msra.mxu0 %vm2184_vm10, %v1838_v0  ;;  %1859 = vmatprep.subr.msk.bf16.mxu1 %vm2184_vm10, %v1857_v1  ;;  %v1755_v1 = vld [vmem:[%s2648_s2 + $0x3] ss:$8 sm:$0xf]  ;;  %v1299_v24 = vrot.slane %v1754_v3, %v2053_v14 }
 0x248   :  { %1862 = vmatpush1.bf16.msk.msra.mxu1 %vm2184_vm10, %v1860_v2  ;;  %v1333_v22 = vrot.slane %v1755_v1, %v2050_v13 }
 0x24a   :  { %1751 = vmatmul.mubr.msk.f32.vlgmr.msra.gmra.mrb[2].mxu0 %vm501_vm11, %v1750_v61 }
 0x24b   :  { %1752 = vmatmul.mubr.msk.f32.vlgmr.msra.gmra.mrb[2].mxu1 %vm501_vm11, %v1750_v61  ;;  %1639 = vmatprep.mubr.f32.mxu0 %v1925_v4  ;;  %v1295_v61 = vrot.slane %v1754_v3, %v2040_v10 }
 0x24c   :  { %1710 = vmatprep.mubr.f32.mxu1 %v1925_v4 }
 0x31d   :  { %v1106_v62 = vpop.f32.mrb[2].mxu0 }
 0x31e   :  { %v1182_v7 = vmul.f32 0.1, %v1106_v62  ;;  %v1108_v63 = vpop.f32.mrb[3].mxu0  ;;  %v1177_v11 = vpop.f32.mrb[2].mxu1 }
 0x31f   :  { %v1183_v5 = vmul.f32 0.1, %v1108_v63  ;;  %v1179_v12 = vpop.f32.mrb[3].mxu1  ;;  %v1184_v15 = vmul.f32 0.1, %v1177_v11 }
 0x320   :  { %v2422_v8 = vmax.f32 %v1106_v62, %v1182_v7  ;;  %v1185_v18 = vmul.f32 0.1, %v1179_v12  ;;  %v1337_v62 = vrot.slane %v1755_v1, %v2040_v10 }
 0x321   :  { %v2424_v16 = vmax.f32 %v1108_v63, %v1183_v5  ;;  %v2430_v19 = vmax.f32 %v1177_v11, %v1184_v15  ;;  %v1291_v5 = vrot.slane %v1754_v3, %v2050_v13 }
 0x322   :  { %1190 = vrot.lane.b32.xlu0 %v2422_v8, %s1918_s16  ;;  %v2432_v4 = vmax.f32 %v1179_v12, %v1185_v18  ;;  %v1303_v12 = vrot.slane %v1754_v3, %v2056_v17  ;;  %v1341_v18 = vrot.slane %v1755_v1, %v2053_v14 }
 0x323   :  { %1192 = vrot.lane.b32.xlu1 %v2424_v16, %s1918_s16 }
 0x326   :  { %1194 = vrot.lane.b32.xlu0 %v2430_v19, %s1918_s16 }
 0x327   :  { %1196 = vrot.lane.b32.xlu1 %v2432_v4, %s1918_s16 }
 0x32a   :  { %1232 = vrot.lane.b32.xlu0 %v2422_v8, %s1919_s21 }
 0x32b   :  { %1234 = vrot.lane.b32.xlu1 %v2424_v16, %s1919_s21 }
 0x32e   :  { %1236 = vrot.lane.b32.xlu0 %v2430_v19, %s1919_s21 }
 0x32f   :  { %1238 = vrot.lane.b32.xlu1 %v2432_v4, %s1919_s21 }
 0x332   :  { %1274 = vrot.lane.b32.xlu0 %v2422_v8, %s1920_s0 }
 0x333   :  { %1276 = vrot.lane.b32.xlu1 %v2424_v16, %s1920_s0 }
 0x336   :  { %1278 = vrot.lane.b32.xlu0 %v2430_v19, %s1920_s0 }
 0x337   :  { %1280 = vrot.lane.b32.xlu1 %v2432_v4, %s1920_s0 }
 0x33a   :  { %1316 = vrot.lane.b32.xlu0 %v2422_v8, %s1921_s22 }
 0x33b   :  { %1318 = vrot.lane.b32.xlu1 %v2424_v16, %s1921_s22 }
 0x33e   :  { %1320 = vrot.lane.b32.xlu0 %v2430_v19, %s1921_s22 }
 0x33f   :  { %1322 = vrot.lane.b32.xlu1 %v2432_v4, %s1921_s22 }
 0x342   :  { %1362 = vrot.lane.b32.xlu0 %v2422_v8, %s1922_s23 }
 0x343   :  { %1364 = vrot.lane.b32.xlu1 %v2424_v16, %s1922_s23 }
 0x346   :  { %1366 = vrot.lane.b32.xlu0 %v2430_v19, %s1922_s23 }
 0x347   :  { %1368 = vrot.lane.b32.xlu1 %v2432_v4, %s1922_s23 }
 0x34a   :  { %1404 = vrot.lane.b32.xlu0 %v2422_v8, %s1923_s24 }
 0x34b   :  { %1406 = vrot.lane.b32.xlu1 %v2424_v16, %s1923_s24 }
 0x34e   :  { %1408 = vrot.lane.b32.xlu0 %v2430_v19, %s1923_s24 }
 0x34f   :  { %1410 = vrot.lane.b32.xlu1 %v2432_v4, %s1923_s24 }
 0x352   :  { %1446 = vrot.lane.b32.xlu0 %v2422_v8, %s1924_s25 }
 0x353   :  { %1448 = vrot.lane.b32.xlu1 %v2424_v16, %s1924_s25 }
 0x356   :  { %1450 = vrot.lane.b32.xlu0 %v2430_v19, %s1924_s25 }
 0x357   :  { %1452 = vrot.lane.b32.xlu1 %v2432_v4, %s1924_s25 }
 0x35a   :  { %1488 = vrot.lane.b32.xlu0 %v2422_v8, %s1926_s26 }
 0x35b   :  { %1490 = vrot.lane.b32.xlu1 %v2424_v16, %s1926_s26 }
 0x35e   :  { %1492 = vrot.lane.b32.xlu0 %v2430_v19, %s1926_s26 }
 0x35f   :  { %1494 = vrot.lane.b32.xlu1 %v2432_v4, %s1926_s26 }
 0x394   :  { %v1191_v20 = vpop.permute.xlu0 %1190 }
 0x395   :  { %v1193_v21 = vpop.permute.xlu1 %1192 }
 0x396   :  { %v1200_v28 = vsel %vm113_vm0, %v1191_v20, %v1193_v21 }
 0x397   :  { %v1225_v35 = vmul.f32 %v1211_v26, %v1200_v28 }
 0x398   :  { %v1195_v23 = vpop.permute.xlu0 %1194 }
 0x399   :  { %v1197_v25 = vpop.permute.xlu1 %1196  ;;  %v1199_v43 = vsel %vm113_vm0, %v1193_v21, %v1195_v23 }
 0x39a   :  { %v1198_v40 = vsel %vm113_vm0, %v1195_v23, %v1197_v25  ;;  %v1201_v41 = vsel %vm113_vm0, %v1197_v25, %v1191_v20  ;;  %v1226_v53 = vmul.f32 %v1215_v39, %v1199_v43  ;;  %v1345_v23 = vrot.slane %v1755_v1, %v2056_v17 }
 0x39b   :  { %v1224_v49 = vmul.f32 %v1207_v31, %v1201_v41  ;;  %v1227_v50 = vmul.f32 %v1219_v32, %v1198_v40 }
 0x39c   :  { %v1233_v29 = vpop.permute.xlu0 %1232 }
 0x39d   :  { %v1235_v30 = vpop.permute.xlu1 %1234 }
 0x39e   :  { %v1242_v33 = vsel %vm156_vm1, %v1233_v29, %v1235_v30 }
 0x39f   :  { %v1267_v36 = vmul.f32 %v1253_v27, %v1242_v33 }
 0x3a0   :  { %v1237_v42 = vpop.permute.xlu0 %1236 }
 0x3a1   :  { %v1241_v44 = vsel %vm156_vm1, %v1235_v30, %v1237_v42  ;;  %v1239_v45 = vpop.permute.xlu1 %1238  ;;  %v1863_v46 = vpack.c.bf16 %v1267_v36, %v1225_v35  ;;  %v1756_v35 = vld [vmem:[%s2648_s2 + $0x4] ss:$8 sm:$0xf] }
 0x3a2   :  { %v1268_v47 = vmul.f32 %v1257_v34, %v1241_v44  ;;  %v1240_v6 = vsel %vm156_vm1, %v1237_v42, %v1239_v45  ;;  %v1243_v48 = vsel %vm156_vm1, %v1239_v45, %v1233_v29  ;;  %v1379_v43 = vrot.slane %v1756_v35, %v2050_v13 }
 0x3a3   :  { %v1266_v51 = vmul.f32 %v1249_v37, %v1243_v48  ;;  %v1269_v52 = vmul.f32 %v1261_v38, %v1240_v6  ;;  %1864 = vmatprep.subr.bf16.mxu0 %v1863_v46  ;;  %v1383_v6 = vrot.slane %v1756_v35, %v2040_v10  ;;  %v1387_v48 = vrot.slane %v1756_v35, %v2053_v14 }
 0x3a4   :  { %v1275_v56 = vpop.permute.xlu0 %1274  ;;  %v1887_v60 = vpack.c.bf16 %v1268_v47, %v1226_v53 }
 0x3a5   :  { %v1865_v57 = vpack.c.bf16 %v1266_v51, %v1224_v49  ;;  %v1277_v58 = vpop.permute.xlu1 %1276  ;;  %v1885_v59 = vpack.c.bf16 %v1269_v52, %v1227_v50  ;;  %v1391_v49 = vrot.slane %v1756_v35, %v2056_v17 }
 0x3a6   :  { %v1284_v7 = vsel %vm200_vm2, %v1275_v56, %v1277_v58 }
 0x3a7   :  { %1866 = vmatpush1.bf16.msra.mxu0 %v1865_v57  ;;  %1886 = vmatprep.subr.bf16.mxu1 %v1885_v59  ;;  %v1309_v20 = vmul.f32 %v1295_v61, %v1284_v7 }
 0x3a8   :  { %v1279_v0 = vpop.permute.xlu0 %1278  ;;  %1888 = vmatpush1.bf16.msra.mxu1 %v1887_v60 }
 0x3a9   :  { %v1281_v2 = vpop.permute.xlu1 %1280  ;;  %v1283_v28 = vsel %vm200_vm2, %v1277_v58, %v1279_v0 }
 0x3aa   :  { %v1282_v25 = vsel %vm200_vm2, %v1279_v0, %v1281_v2  ;;  %v1285_v26 = vsel %vm200_vm2, %v1281_v2, %v1275_v56  ;;  %v1310_v40 = vmul.f32 %v1299_v24, %v1283_v28 }
 0x3ab   :  { %v1308_v36 = vmul.f32 %v1291_v5, %v1285_v26  ;;  %v1311_v37 = vmul.f32 %v1303_v12, %v1282_v25 }
 0x3ac   :  { %v1317_v63 = vpop.permute.xlu0 %1316 }
 0x3ad   :  { %v1319_v11 = vpop.permute.xlu1 %1318 }
 0x3ae   :  { %v1326_v15 = vsel %vm244_vm3, %v1317_v63, %v1319_v11 }
 0x3af   :  { %v1351_v21 = vmul.f32 %v1337_v62, %v1326_v15 }
 0x3b0   :  { %v1321_v27 = vpop.permute.xlu0 %1320 }
 0x3b1   :  { %v1325_v29 = vsel %vm244_vm3, %v1319_v11, %v1321_v27  ;;  %v1323_v30 = vpop.permute.xlu1 %1322  ;;  %v1867_v31 = vpack.c.bf16 %v1351_v21, %v1309_v20  ;;  %v1757_v11 = vld [vmem:[%s2648_s2 + $0x5] ss:$8 sm:$0xf] }
 0x3b2   :  { %v1352_v32 = vmul.f32 %v1341_v18, %v1325_v29  ;;  %v1324_v33 = vsel %vm244_vm3, %v1321_v27, %v1323_v30  ;;  %v1327_v34 = vsel %vm244_vm3, %v1323_v30, %v1317_v63  ;;  %v1425_v5 = vrot.slane %v1757_v11, %v2040_v10 }
 0x3b3   :  { %v1350_v38 = vmul.f32 %v1333_v22, %v1327_v34  ;;  %v1353_v39 = vmul.f32 %v1345_v23, %v1324_v33  ;;  %1868 = vmatprep.subr.bf16.mxu0 %v1867_v31  ;;  %v1429_v18 = vrot.slane %v1757_v11, %v2053_v14  ;;  %v1433_v23 = vrot.slane %v1757_v11, %v2056_v17 }
 0x3b4   :  { %v1363_v41 = vpop.permute.xlu0 %1362  ;;  %v1891_v46 = vpack.c.bf16 %v1352_v32, %v1310_v40 }
 0x3b5   :  { %v1869_v42 = vpack.c.bf16 %v1350_v38, %v1308_v36  ;;  %v1365_v44 = vpop.permute.xlu1 %1364  ;;  %v1889_v45 = vpack.c.bf16 %v1353_v39, %v1311_v37  ;;  %v1759_v37 = vld [vmem:[%s2648_s2 + $0x7] ss:$8 sm:$0xf] }
 0x3b6   :  { %v1372_v47 = vsel %vm292_vm4, %v1363_v41, %v1365_v44 }
 0x3b7   :  { %1870 = vmatpush1.bf16.msra.mxu0 %v1869_v42  ;;  %1890 = vmatprep.subr.bf16.mxu1 %v1889_v45  ;;  %v1396_v51 = vmul.f32 %v1379_v43, %v1372_v47 }
 0x3b8   :  { %v1367_v50 = vpop.permute.xlu0 %1366  ;;  %1892 = vmatpush1.bf16.msra.mxu1 %v1891_v46  ;;  %v1505_v46 = vrot.slane %v1759_v37, %v2050_v13 }
 0x3b9   :  { %v1371_v52 = vsel %vm292_vm4, %v1365_v44, %v1367_v50  ;;  %v1369_v53 = vpop.permute.xlu1 %1368  ;;  %v1873_v1 = vpack.c.bf16 %v1396_v51, %v2422_v8  ;;  %v1517_v51 = vrot.slane %v1759_v37, %v2056_v17 }
 0x3ba   :  { %v1397_v56 = vmul.f32 %v1383_v6, %v1371_v52  ;;  %v1370_v57 = vsel %vm292_vm4, %v1367_v50, %v1369_v53  ;;  %v1373_v58 = vsel %vm292_vm4, %v1369_v53, %v1363_v41  ;;  %v1513_v50 = vrot.slane %v1759_v37, %v2053_v14 }
 0x3bb   :  { %v1398_v59 = vmul.f32 %v1387_v48, %v1370_v57  ;;  %v1399_v60 = vmul.f32 %v1391_v49, %v1373_v58  ;;  %v1509_v49 = vrot.slane %v1759_v37, %v2040_v10 }
 0x3bc   :  { %v1405_v3 = vpop.permute.xlu0 %1404  ;;  %v1871_v0 = vpack.c.bf16 %v1397_v56, %v2424_v16  ;;  %v1758_v16 = vld [vmem:[%s2648_s2 + $0x6] ss:$8 sm:$0xf] }
 0x3bd   :  { %v1895_v2 = vpack.c.bf16 %v1398_v59, %v2430_v19  ;;  %v1407_v61 = vpop.permute.xlu1 %1406  ;;  %v1893_v62 = vpack.c.bf16 %v1399_v60, %v2432_v4  ;;  %v1421_v19 = vrot.slane %v1757_v11, %v2050_v13  ;;  %v1463_v4 = vrot.slane %v1758_v16, %v2050_v13 }
 0x3be   :  { %1872 = vmatprep.subr.bf16.mxu0 %v1871_v0  ;;  %v1414_v15 = vsel %vm336_vm6, %v1405_v3, %v1407_v61  ;;  %v1467_v21 = vrot.slane %v1758_v16, %v2040_v10  ;;  %v1471_v24 = vrot.slane %v1758_v16, %v2053_v14  ;;  %v1475_v25 = vrot.slane %v1758_v16, %v2056_v17 }
 0x3bf   :  { %1874 = vmatpush1.bf16.msra.mxu0 %v1873_v1  ;;  %1894 = vmatprep.subr.bf16.mxu1 %v1893_v62  ;;  %v1438_v29 = vmul.f32 %v1421_v19, %v1414_v15 }
 0x3c0   :  { %v1409_v7 = vpop.permute.xlu0 %1408  ;;  %1896 = vmatpush1.bf16.msra.mxu1 %v1895_v2 }
 0x3c1   :  { %v1411_v63 = vpop.permute.xlu1 %1410  ;;  %v1413_v22 = vsel %vm336_vm6, %v1407_v61, %v1409_v7 }
 0x3c2   :  { %v1412_v26 = vsel %vm336_vm6, %v1409_v7, %v1411_v63  ;;  %v1415_v27 = vsel %vm336_vm6, %v1411_v63, %v1405_v3  ;;  %v1439_v33 = vmul.f32 %v1425_v5, %v1413_v22 }
 0x3c3   :  { %v1440_v38 = vmul.f32 %v1429_v18, %v1412_v26  ;;  %v1441_v39 = vmul.f32 %v1433_v23, %v1415_v27 }
 0x3c4   :  { %v1447_v8 = vpop.permute.xlu0 %1446 }
 0x3c5   :  { %v1449_v12 = vpop.permute.xlu1 %1448 }
 0x3c6   :  { %v1456_v20 = vsel %vm380_vm5, %v1447_v8, %v1449_v12 }
 0x3c7   :  { %v1480_v30 = vmul.f32 %v1463_v4, %v1456_v20 }
 0x3c8   :  { %v1451_v28 = vpop.permute.xlu0 %1450 }
 0x3c9   :  { %v1455_v31 = vsel %vm380_vm5, %v1449_v12, %v1451_v28  ;;  %v1453_v32 = vpop.permute.xlu1 %1452  ;;  %v1877_v44 = vpack.c.bf16 %v1480_v30, %v1438_v29 }
 0x3ca   :  { %v1481_v34 = vmul.f32 %v1467_v21, %v1455_v31  ;;  %v1454_v35 = vsel %vm380_vm5, %v1451_v28, %v1453_v32  ;;  %v1457_v36 = vsel %vm380_vm5, %v1453_v32, %v1447_v8 }
 0x3cb   :  { %v1482_v40 = vmul.f32 %v1471_v24, %v1454_v35  ;;  %v1483_v41 = vmul.f32 %v1475_v25, %v1457_v36 }
 0x3cc   :  { %v1489_v42 = vpop.permute.xlu0 %1488  ;;  %v1875_v43 = vpack.c.bf16 %v1481_v34, %v1439_v33 }
 0x3cd   :  { %v1899_v45 = vpack.c.bf16 %v1482_v40, %v1440_v38  ;;  %v1491_v47 = vpop.permute.xlu1 %1490  ;;  %v1897_v6 = vpack.c.bf16 %v1483_v41, %v1441_v39 }
 0x3ce   :  { %v1498_v48 = vsel %vm424_vm7, %v1489_v42, %v1491_v47  ;;  %1876 = vmatprep.subr.bf16.mxu0 %v1875_v43 }
 0x3cf   :  { %1878 = vmatpush1.bf16.msra.mxu0 %v1877_v44  ;;  %1898 = vmatprep.subr.bf16.mxu1 %v1897_v6  ;;  %v1522_v53 = vmul.f32 %v1505_v46, %v1498_v48 }
 0x3d0   :  { %v1493_v52 = vpop.permute.xlu0 %1492  ;;  %1900 = vmatpush1.bf16.msra.mxu1 %v1899_v45 }
 0x3d1   :  { %v1497_v13 = vsel %vm424_vm7, %v1491_v47, %v1493_v52  ;;  %v1495_v56 = vpop.permute.xlu1 %1494  ;;  %v1882_v17 = vpack.c.bf16 %v1928_v55, %v1522_v53 }
 0x3d2   :  { %v1523_v57 = vmul.f32 %v1509_v49, %v1497_v13  ;;  %v1496_v58 = vsel %vm424_vm7, %v1493_v52, %v1495_v56  ;;  %v1499_v10 = vsel %vm424_vm7, %v1495_v56, %v1489_v42 }
 0x3d3   :  { %v1524_v59 = vmul.f32 %v1513_v50, %v1496_v58  ;;  %v1525_v60 = vmul.f32 %v1517_v51, %v1499_v10 }
 0x3d4   :  { %v1879_v14 = vpack.c.bf16 %v1928_v55, %v1523_v57 }
 0x3d5   :  { %v1901_v3 = vpack.c.bf16 %v1928_v55, %v1525_v60  ;;  %v1904_v0 = vpack.c.bf16 %v1928_v55, %v1524_v59 }
 0x3d6   :  { %1881 = vmatprep.subr.msk.bf16.mxu0 %vm2184_vm10, %v1879_v14 }
 0x3d7   :  { %1884 = vmatpush1.bf16.msk.msra.mxu0 %vm2184_vm10, %v1882_v17  ;;  %1903 = vmatprep.subr.msk.bf16.mxu1 %vm2184_vm10, %v1901_v3 }
 0x3d8   :  { %1906 = vmatpush1.bf16.msk.msra.mxu1 %vm2184_vm10, %v1904_v0 }
 0x3da   :  { %1761 = vmatmul.mubr.msk.f32.vlgmr.msra.gmra.mrb[4].mxu0 %vm501_vm11, %v1760_v9 }
 0x3db   :  { %1762 = vmatmul.mubr.msk.f32.vlgmr.msra.gmra.mrb[4].mxu1 %vm501_vm11, %v1760_v9 }
 0x4ad   :  { %v1641_v55 = vpop.f32.mrb[4].mxu0 }
 0x4ae   :  { %v1717_v1 = vmul.f32 0.1, %v1641_v55  ;;  %v1643_v2 = vpop.f32.mrb[5].mxu0  ;;  %v1712_v61 = vpop.f32.mrb[4].mxu1 }
 0x4af   :  { %v1718_v62 = vmul.f32 0.1, %v1643_v2  ;;  %v1719_v7 = vmul.f32 0.1, %v1712_v61  ;;  %v1714_v63 = vpop.f32.mrb[5].mxu1 }
 0x4b0   :  { %v1721_v11 = vmax.f32 %v1641_v55, %v1717_v1  ;;  %v1720_v16 = vmul.f32 0.1, %v1714_v63 }
 0x4b1   :  { %v1722_v8 = vmax.f32 %v1643_v2, %v1718_v62  ;;  %v1723_v19 = vmax.f32 %v1712_v61, %v1719_v7 }
 0x4b2   :  { %1725 = vst [vmem:[%s2650_s3] sm:$0xff] %v1721_v11  ;;  %v1724_v54 = vmax.f32 %v1714_v63, %v1720_v16 }
 0x4b3   :  { %1726 = vst [vmem:[%s2650_s3 + $0x8] sm:$0xff] %v1722_v8  ;;  %1727 = vst [vmem:[%s2650_s3 + $0x10] sm:$0xff] %v1723_v19 }
 0x4b4   :  { %1728 = vst [vmem:[%s2650_s3 + $0x18] sm:$0xff] %v1724_v54 }

</bundles_post_ra>
